<compile_context>
chip_gen: v7x
topology: tpu7x:2x2x1
jax: 0.10.0
libtpu: 0.0.40
codegen_flags: <defaults>
</compile_context>

<pallas_src>
import functools

import jax
import jax.numpy as jnp
from jax.experimental import pallas as pl
from jax.experimental.pallas import tpu as pltpu

HIDDEN1 = 512
HIDDEN2 = 256
LANE = 128
TB = 128  # batch tile: multiple of MXU systolic height on all generations


def _round_up(n, m):
    return ((n + m - 1) // m) * m


def _mlp_kernel(x_ref, w1_ref, b1_ref, w2_ref, b2_ref, w3_ref, b3_ref, o_ref):
    # fc1 + ReLU (accumulate in f32 regardless of operand dtype)
    h1 = jnp.dot(x_ref[...], w1_ref[...], preferred_element_type=jnp.float32)
    h1 = jnp.maximum(h1 + b1_ref[...], 0.0)
    # fc2 + ReLU
    h2 = jnp.dot(h1.astype(w2_ref.dtype), w2_ref[...],
                 preferred_element_type=jnp.float32)
    h2 = jnp.maximum(h2 + b2_ref[...], 0.0)
    # fc3 (no activation)
    h3 = jnp.dot(h2.astype(w3_ref.dtype), w3_ref[...],
                 preferred_element_type=jnp.float32)
    o_ref[...] = (h3 + b3_ref[...]).astype(o_ref.dtype)


@functools.partial(jax.jit, static_argnames=("use_bf16",))
def regression_network_forward(x, params, use_bf16=False):
    """x: (B, input_size) f32; params: dict of w1,b1,w2,b2,w3,b3 (w as (in,out))."""
    w1, b1 = params["w1"], params["b1"]
    w2, b2 = params["w2"], params["b2"]
    w3, b3 = params["w3"], params["b3"]

    B, in_size = x.shape
    out_size = w3.shape[1]

    # --- pad to MXU/lane-friendly shapes (zero padding keeps math exact) ---
    B_pad = _round_up(max(B, TB), TB)
    in_pad = _round_up(in_size, LANE)
    out_pad = _round_up(out_size, LANE)

    x_p = jnp.zeros((B_pad, in_pad), jnp.float32).at[:B, :in_size].set(x)
    w1_p = jnp.zeros((in_pad, HIDDEN1), jnp.float32).at[:in_size, :].set(w1)
    w3_p = jnp.zeros((HIDDEN2, out_pad), jnp.float32).at[:, :out_size].set(w3)
    b3_p = jnp.zeros((1, out_pad), jnp.float32).at[:, :out_size].set(b3)

    compute_dtype = jnp.bfloat16 if use_bf16 else jnp.float32
    x_p = x_p.astype(compute_dtype)
    w1_p = w1_p.astype(compute_dtype)
    w2_c = w2.astype(compute_dtype)
    w3_p = w3_p.astype(compute_dtype)

    grid = (B_pad // TB,)

    # x / out tiled over batch; weights & biases resident (constant index_map).
    in_specs = [
        pl.BlockSpec((TB, in_pad), lambda i: (i, 0)),          # x tile
        pl.BlockSpec((in_pad, HIDDEN1), lambda i: (0, 0)),     # w1
        pl.BlockSpec((1, HIDDEN1), lambda i: (0, 0)),          # b1
        pl.BlockSpec((HIDDEN1, HIDDEN2), lambda i: (0, 0)),    # w2
        pl.BlockSpec((1, HIDDEN2), lambda i: (0, 0)),          # b2
        pl.BlockSpec((HIDDEN2, out_pad), lambda i: (0, 0)),    # w3
        pl.BlockSpec((1, out_pad), lambda i: (0, 0)),          # b3
    ]
    out_specs = pl.BlockSpec((TB, out_pad), lambda i: (i, 0))

    itemsize = jnp.dtype(compute_dtype).itemsize
    flops = 2 * B_pad * (in_pad * HIDDEN1 + HIDDEN1 * HIDDEN2 + HIDDEN2 * out_pad)
    bytes_accessed = (
        B_pad * in_pad * itemsize
        + (in_pad * HIDDEN1 + HIDDEN1 * HIDDEN2 + HIDDEN2 * out_pad) * itemsize
        + (HIDDEN1 + HIDDEN2 + out_pad) * 4
        + B_pad * out_pad * 4
    )

    out_padded = pl.pallas_call(
        _mlp_kernel,
        out_shape=jax.ShapeDtypeStruct((B_pad, out_pad), jnp.float32),
        grid_spec=pltpu.PrefetchScalarGridSpec(
            num_scalar_prefetch=0,
            grid=grid,
            in_specs=in_specs,
            out_specs=out_specs,
        ),
        compiler_params=pltpu.CompilerParams(
            dimension_semantics=("parallel",),
            vmem_limit_bytes=32 * 1024 * 1024,
        ),
        cost_estimate=pl.CostEstimate(
            flops=flops, transcendentals=0, bytes_accessed=bytes_accessed
        ),
    )(x_p, w1_p, b1, w2_c, b2, w3_p, b3_p)

    return out_padded[:B, :out_size]


def init_params(key, input_size, output_size):
    """Deterministic parameter init mimicking nn.Linear default (uniform)."""
    def linear_init(k, fan_in, fan_out):
        kw, kb = jax.random.split(k)
        bound = 1.0 / (fan_in ** 0.5)
        w = jax.random.uniform(kw, (fan_in, fan_out), jnp.float32, -bound, bound)
        b = jax.random.uniform(kb, (1, fan_out), jnp.float32, -bound, bound)
        return w, b

    k1, k2, k3 = jax.random.split(key, 3)
    w1, b1 = linear_init(k1, input_size, HIDDEN1)
    w2, b2 = linear_init(k2, HIDDEN1, HIDDEN2)
    w3, b3 = linear_init(k3, HIDDEN2, output_size)
    return {"w1": w1, "b1": b1, "w2": w2, "b2": b2, "w3": w3, "b3": b3}


if __name__ == "__main__":
    key = jax.random.PRNGKey(0)
    k_params, k_x = jax.random.split(key)

    batch = 8
    input_size = 32
    output_size = 8

    params = init_params(k_params, input_size, output_size)
    x = jax.random.normal(k_x, (batch, input_size), jnp.float32)

    out = regression_network_forward(x, params)  # f32 path (exact semantics)
    jax.block_until_ready(out)

    # Sanity check against a pure-JAX reference of the same forward pass.
    def ref(x, p):
        h = jnp.maximum(x @ p["w1"] + p["b1"], 0.0)
        h = jnp.maximum(h @ p["w2"] + p["b2"], 0.0)
        return h @ p["w3"] + p["b3"]

    expected = ref(x, params)
    assert out.shape == (batch, output_size)
    assert jnp.allclose(out, expected, atol=1e-4, rtol=1e-4)

    # Also exercise the bf16-operand path (f32 accumulation) once.
    out_bf16 = regression_network_forward(x, params, use_bf16=True)
    jax.block_until_ready(out_bf16)
    assert jnp.allclose(out_bf16, expected, atol=5e-2, rtol=5e-2)

    print("KERNEL_OK")
</pallas_src>

<mosaic_0001>
module attributes {stable_mosaic.version = 11 : i64} {
  func.func @_mlp_kernel(%arg0: i32, %arg1: memref<128x128xf32, #tpu.memory_space<vmem>>, %arg2: memref<128x512xf32, #tpu.memory_space<vmem>>, %arg3: memref<1x512xf32, #tpu.memory_space<vmem>>, %arg4: memref<512x256xf32, #tpu.memory_space<vmem>>, %arg5: memref<1x256xf32, #tpu.memory_space<vmem>>, %arg6: memref<256x128xf32, #tpu.memory_space<vmem>>, %arg7: memref<1x128xf32, #tpu.memory_space<vmem>>, %arg8: memref<128x128xf32, #tpu.memory_space<vmem>>) attributes {dimension_semantics = [#tpu.dimension_semantics<parallel>], iteration_bounds = array<i64: 1>, scalar_prefetch = 0 : i64, scratch_operands = 0 : i64, tpu.core_type = #tpu.core_type<tc>, window_params = [{transform_indices = @transform_0, window_bounds = array<i64: 128, 128>}, {pipeline_mode = #tpu.pipeline_mode<synchronous>, transform_indices = @transform_1, window_bounds = array<i64: 128, 512>}, {pipeline_mode = #tpu.pipeline_mode<synchronous>, transform_indices = @transform_2, window_bounds = array<i64: 1, 512>}, {pipeline_mode = #tpu.pipeline_mode<synchronous>, transform_indices = @transform_3, window_bounds = array<i64: 512, 256>}, {pipeline_mode = #tpu.pipeline_mode<synchronous>, transform_indices = @transform_4, window_bounds = array<i64: 1, 256>}, {pipeline_mode = #tpu.pipeline_mode<synchronous>, transform_indices = @transform_5, window_bounds = array<i64: 256, 128>}, {pipeline_mode = #tpu.pipeline_mode<synchronous>, transform_indices = @transform_6, window_bounds = array<i64: 1, 128>}, {transform_indices = @transform_7, window_bounds = array<i64: 128, 128>}]} {
    %c0 = arith.constant 0 : index
    %c0_0 = arith.constant 0 : index
    %0 = vector.load %arg1[%c0, %c0_0] : memref<128x128xf32, #tpu.memory_space<vmem>>, vector<128x128xf32>
    %c0_1 = arith.constant 0 : index
    %c0_2 = arith.constant 0 : index
    %1 = vector.load %arg2[%c0_1, %c0_2] : memref<128x512xf32, #tpu.memory_space<vmem>>, vector<128x512xf32>
    %cst = arith.constant dense<0.000000e+00> : vector<128x512xf32>
    %2 = tpu.matmul %0, %1, %cst {dimension_numbers = #tpu.dot_dimension_numbers<[1], [0], [0], [1], [0, 0, 1, 1], [], []>} : vector<128x128xf32>, vector<128x512xf32>, vector<128x512xf32> -> vector<128x512xf32>
    %c0_3 = arith.constant 0 : index
    %c0_4 = arith.constant 0 : index
    %3 = vector.load %arg3[%c0_3, %c0_4] : memref<1x512xf32, #tpu.memory_space<vmem>>, vector<1x512xf32>
    %4 = vector.broadcast %3 : vector<1x512xf32> to vector<128x512xf32>
    %5 = arith.addf %2, %4 : vector<128x512xf32>
    %cst_5 = arith.constant 0.000000e+00 : f32
    %6 = vector.broadcast %cst_5 : f32 to vector<128x512xf32>
    %7 = arith.maximumf %5, %6 : vector<128x512xf32>
    %c0_6 = arith.constant 0 : index
    %c0_7 = arith.constant 0 : index
    %8 = vector.load %arg4[%c0_6, %c0_7] : memref<512x256xf32, #tpu.memory_space<vmem>>, vector<512x256xf32>
    %cst_8 = arith.constant dense<0.000000e+00> : vector<128x256xf32>
    %9 = tpu.matmul %7, %8, %cst_8 {dimension_numbers = #tpu.dot_dimension_numbers<[1], [0], [0], [1], [0, 0, 1, 1], [], []>} : vector<128x512xf32>, vector<512x256xf32>, vector<128x256xf32> -> vector<128x256xf32>
    %c0_9 = arith.constant 0 : index
    %c0_10 = arith.constant 0 : index
    %10 = vector.load %arg5[%c0_9, %c0_10] : memref<1x256xf32, #tpu.memory_space<vmem>>, vector<1x256xf32>
    %11 = vector.broadcast %10 : vector<1x256xf32> to vector<128x256xf32>
    %12 = arith.addf %9, %11 : vector<128x256xf32>
    %cst_11 = arith.constant 0.000000e+00 : f32
    %13 = vector.broadcast %cst_11 : f32 to vector<128x256xf32>
    %14 = arith.maximumf %12, %13 : vector<128x256xf32>
    %c0_12 = arith.constant 0 : index
    %c0_13 = arith.constant 0 : index
    %15 = vector.load %arg6[%c0_12, %c0_13] : memref<256x128xf32, #tpu.memory_space<vmem>>, vector<256x128xf32>
    %cst_14 = arith.constant dense<0.000000e+00> : vector<128x128xf32>
    %16 = tpu.matmul %14, %15, %cst_14 {dimension_numbers = #tpu.dot_dimension_numbers<[1], [0], [0], [1], [0, 0, 1, 1], [], []>} : vector<128x256xf32>, vector<256x128xf32>, vector<128x128xf32> -> vector<128x128xf32>
    %c0_15 = arith.constant 0 : index
    %c0_16 = arith.constant 0 : index
    %17 = vector.load %arg7[%c0_15, %c0_16] : memref<1x128xf32, #tpu.memory_space<vmem>>, vector<1x128xf32>
    %18 = vector.broadcast %17 : vector<1x128xf32> to vector<128x128xf32>
    %19 = arith.addf %16, %18 : vector<128x128xf32>
    %c0_17 = arith.constant 0 : index
    %c0_18 = arith.constant 0 : index
    %20 = vector.load %arg8[%c0_17, %c0_18] : memref<128x128xf32, #tpu.memory_space<vmem>>, vector<128x128xf32>
    tpu.vector_store %arg8[%c0_17, %c0_18], %19 {strides = array<i32>} : memref<128x128xf32, #tpu.memory_space<vmem>>, vector<128x128xf32>,
    return
  }
  func.func @transform_0(%arg0: i32) -> (i32, i32) {
    %c0_i32 = arith.constant 0 : i32
    %c0_i32_0 = arith.constant 0 : i32
    return %arg0, %c0_i32 : i32, i32
  }
  func.func @transform_1(%arg0: i32) -> (i32, i32) {
    %c0_i32 = arith.constant 0 : i32
    %c0_i32_0 = arith.constant 0 : i32
    %c0_i32_1 = arith.constant 0 : i32
    return %c0_i32, %c0_i32_0 : i32, i32
  }
  func.func @transform_2(%arg0: i32) -> (i32, i32) {
    %c0_i32 = arith.constant 0 : i32
    %c0_i32_0 = arith.constant 0 : i32
    %c0_i32_1 = arith.constant 0 : i32
    return %c0_i32, %c0_i32_0 : i32, i32
  }
  func.func @transform_3(%arg0: i32) -> (i32, i32) {
    %c0_i32 = arith.constant 0 : i32
    %c0_i32_0 = arith.constant 0 : i32
    %c0_i32_1 = arith.constant 0 : i32
    return %c0_i32, %c0_i32_0 : i32, i32
  }
  func.func @transform_4(%arg0: i32) -> (i32, i32) {
    %c0_i32 = arith.constant 0 : i32
    %c0_i32_0 = arith.constant 0 : i32
    %c0_i32_1 = arith.constant 0 : i32
    return %c0_i32, %c0_i32_0 : i32, i32
  }
  func.func @transform_5(%arg0: i32) -> (i32, i32) {
    %c0_i32 = arith.constant 0 : i32
    %c0_i32_0 = arith.constant 0 : i32
    %c0_i32_1 = arith.constant 0 : i32
    return %c0_i32, %c0_i32_0 : i32, i32
  }
  func.func @transform_6(%arg0: i32) -> (i32, i32) {
    %c0_i32 = arith.constant 0 : i32
    %c0_i32_0 = arith.constant 0 : i32
    %c0_i32_1 = arith.constant 0 : i32
    return %c0_i32, %c0_i32_0 : i32, i32
  }
  func.func @transform_7(%arg0: i32) -> (i32, i32) {
    %c0_i32 = arith.constant 0 : i32
    %c0_i32_0 = arith.constant 0 : i32
    return %arg0, %c0_i32 : i32, i32
  }
}

</mosaic_0001>

<bundles_post_ra>
// kernel: regression_network_forward.1
= control target key start
LH: loop header
LB: loop body
LE: loop exit
PB: predicated region body
PF: predicated region fallthrough
CT: control target
= control target key end

     0   :  { %v1614_v3 = vmov 0.0   ;;  %s2834_s1 = inlined_call_operand.vmem [shape: f32[128,512], index: 1, kind: input, shape index: {}]   ;;  %s2835_s3 = inlined_call_operand.vmem [shape: f32[512,256], index: 3, kind: input, shape index: {}]   ;;  %s2836_s0 = inlined_call_operand.vmem [shape: f32[128,128], index: 0, kind: input, shape index: {}]   ;;  %s2837_s2 = inlined_call_operand.vmem [shape: f32[1,512], index: 2, kind: input, shape index: {}]   ;;  %s2838_s5 = inlined_call_operand.vmem [shape: f32[256,128], index: 5, kind: input, shape index: {}]   ;;  %s2839_s4 = inlined_call_operand.vmem [shape: f32[1,256], index: 4, kind: input, shape index: {}]   ;;  %s2840_s6 = inlined_call_operand.vmem [shape: f32[1,128], index: 6, kind: input, shape index: {}]   ;;  %s2841_s7 = inlined_call_operand.vmem [shape: f32[128,128], index: 7, kind: output, shape index: {}]  }
   0x1   :  { %v43_v0 = vld [vmem:[%s2834_s1 + $0x8] sm:$0xff]  ;;  %v42_v2 = vld [vmem:[%s2834_s1] sm:$0xff]  ;;  %192 = vmatprep.mubr.f32.mxu0 %v1614_v3  ;;  %353 = vmatprep.mubr.f32.mxu1 %v1614_v3  ;;  %v45_v6 = vld [vmem:[%s2834_s1 + $0x18] sm:$0xff] }
   0x2   :  { %v47_v1 = vld [vmem:[%s2834_s1 + $0x28] sm:$0xff]  ;;  %v46_v5 = vld [vmem:[%s2834_s1 + $0x20] sm:$0xff]  ;;  %v49_v7 = vld [vmem:[%s2834_s1 + $0x38] sm:$0xff] }
   0x3   :  { %v1293_v4 = vpack.c.bf16 %v47_v1, %v43_v0  ;;  %v1295_v8 = vpack.c.bf16 %v46_v5, %v42_v2  ;;  %v1325_v9 = vpack.c.bf16 %v49_v7, %v45_v6  ;;  %v44_v10 = vld [vmem:[%s2834_s1 + $0x10] sm:$0xff]  ;;  %v51_v12 = vld [vmem:[%s2834_s1 + $0x48] sm:$0xff]  ;;  %v50_v15 = vld [vmem:[%s2834_s1 + $0x40] sm:$0xff] }
   0x4   :  { %v48_v11 = vld [vmem:[%s2834_s1 + $0x30] sm:$0xff]  ;;  %v55_v14 = vld [vmem:[%s2834_s1 + $0x68] sm:$0xff]  ;;  %v54_v16 = vld [vmem:[%s2834_s1 + $0x60] sm:$0xff] }
   0x5   :  { %1294 = vmatprep.subr.bf16.mxu0 %v1293_v4  ;;  %v1327_v13 = vpack.c.bf16 %v48_v11, %v44_v10  ;;  %1326 = vmatprep.subr.bf16.mxu1 %v1325_v9  ;;  %v1297_v17 = vpack.c.bf16 %v55_v14, %v51_v12  ;;  %v1299_v18 = vpack.c.bf16 %v54_v16, %v50_v15  ;;  %v53_v19 = vld [vmem:[%s2834_s1 + $0x58] sm:$0xff]  ;;  %v52_v21 = vld [vmem:[%s2834_s1 + $0x50] sm:$0xff]  ;;  %v59_v24 = vld [vmem:[%s2834_s1 + $0x88] sm:$0xff] }
   0x6   :  { %1296 = vmatpush1.bf16.msra.mxu0 %v1295_v8  ;;  %v57_v20 = vld [vmem:[%s2834_s1 + $0x78] sm:$0xff]  ;;  %v56_v23 = vld [vmem:[%s2834_s1 + $0x70] sm:$0xff]  ;;  %v63_v25 = vld [vmem:[%s2834_s1 + $0xa8] sm:$0xff] }
   0x7   :  { %1328 = vmatpush1.bf16.msra.mxu1 %v1327_v13  ;;  %v1329_v22 = vpack.c.bf16 %v57_v20, %v53_v19  ;;  %1298 = vmatprep.subr.bf16.mxu0 %v1297_v17  ;;  %v1331_v26 = vpack.c.bf16 %v56_v23, %v52_v21  ;;  %v1301_v27 = vpack.c.bf16 %v63_v25, %v59_v24  ;;  %v58_v28 = vld [vmem:[%s2834_s1 + $0x80] sm:$0xff]  ;;  %v61_v30 = vld [vmem:[%s2834_s1 + $0x98] sm:$0xff]  ;;  %v60_v32 = vld [vmem:[%s2834_s1 + $0x90] sm:$0xff] }
   0x8   :  { %v62_v29 = vld [vmem:[%s2834_s1 + $0xa0] sm:$0xff]  ;;  %v65_v31 = vld [vmem:[%s2834_s1 + $0xb8] sm:$0xff]  ;;  %v64_v33 = vld [vmem:[%s2834_s1 + $0xb0] sm:$0xff] }
   0x9   :  { %1330 = vmatprep.subr.bf16.mxu1 %v1329_v22  ;;  %v1303_v34 = vpack.c.bf16 %v62_v29, %v58_v28  ;;  %v1333_v35 = vpack.c.bf16 %v65_v31, %v61_v30  ;;  %v67_v36 = vld [vmem:[%s2834_s1 + $0xc8] sm:$0xff]  ;;  %v66_v38 = vld [vmem:[%s2834_s1 + $0xc0] sm:$0xff]  ;;  %v1335_v39 = vpack.c.bf16 %v64_v33, %v60_v32  ;;  %v69_v42 = vld [vmem:[%s2834_s1 + $0xd8] sm:$0xff] }
   0xa   :  { %1300 = vmatpush1.bf16.msra.mxu0 %v1299_v18  ;;  %v71_v37 = vld [vmem:[%s2834_s1 + $0xe8] sm:$0xff]  ;;  %v70_v41 = vld [vmem:[%s2834_s1 + $0xe0] sm:$0xff]  ;;  %v73_v43 = vld [vmem:[%s2834_s1 + $0xf8] sm:$0xff] }
   0xb   :  { %1332 = vmatpush1.bf16.msra.mxu1 %v1331_v26  ;;  %1302 = vmatprep.subr.bf16.mxu0 %v1301_v27  ;;  %v1305_v40 = vpack.c.bf16 %v71_v37, %v67_v36  ;;  %v1337_v44 = vpack.c.bf16 %v73_v43, %v69_v42  ;;  %v68_v45 = vld [vmem:[%s2834_s1 + $0xd0] sm:$0xff]  ;;  %v75_v47 = vld [vmem:[%s2834_s1 + $0x108] sm:$0xff]  ;;  %v1307_v49 = vpack.c.bf16 %v70_v41, %v66_v38  ;;  %v77_v50 = vld [vmem:[%s2834_s1 + $0x118] sm:$0xff] }
   0xc   :  { %1334 = vmatprep.subr.bf16.mxu1 %v1333_v35  ;;  %v72_v46 = vld [vmem:[%s2834_s1 + $0xf0] sm:$0xff]  ;;  %v79_v48 = vld [vmem:[%s2834_s1 + $0x128] sm:$0xff]  ;;  %v81_v51 = vld [vmem:[%s2834_s1 + $0x138] sm:$0xff] }
   0xd   :  { %v1339_v52 = vpack.c.bf16 %v72_v46, %v68_v45  ;;  %v1309_v53 = vpack.c.bf16 %v79_v48, %v75_v47  ;;  %v74_v54 = vld [vmem:[%s2834_s1 + $0x100] sm:$0xff]  ;;  %v76_v56 = vld [vmem:[%s2834_s1 + $0x110] sm:$0xff]  ;;  %v1341_v57 = vpack.c.bf16 %v81_v51, %v77_v50  ;;  %v83_v59 = vld [vmem:[%s2834_s1 + $0x148] sm:$0xff] }
   0xe   :  { %1304 = vmatpush1.bf16.msra.mxu0 %v1303_v34  ;;  %v78_v55 = vld [vmem:[%s2834_s1 + $0x120] sm:$0xff]  ;;  %v80_v58 = vld [vmem:[%s2834_s1 + $0x130] sm:$0xff]  ;;  %v87_v60 = vld [vmem:[%s2834_s1 + $0x168] sm:$0xff] }
   0xf   :  { %1336 = vmatpush1.bf16.msra.mxu1 %v1335_v39  ;;  %1306 = vmatprep.subr.bf16.mxu0 %v1305_v40  ;;  %v85_v61 = vld [vmem:[%s2834_s1 + $0x158] sm:$0xff]  ;;  %v1311_v63 = vpack.c.bf16 %v78_v55, %v74_v54  ;;  %v1343_v0 = vpack.c.bf16 %v80_v58, %v76_v56  ;;  %v1313_v1 = vpack.c.bf16 %v87_v60, %v83_v59  ;;  %v82_v2 = vld [vmem:[%s2834_s1 + $0x140] sm:$0xff]  ;;  %v84_v5 = vld [vmem:[%s2834_s1 + $0x150] sm:$0xff] }
  0x10   :  { %1338 = vmatprep.subr.bf16.mxu1 %v1337_v44  ;;  %v89_v62 = vld [vmem:[%s2834_s1 + $0x178] sm:$0xff]  ;;  %v86_v4 = vld [vmem:[%s2834_s1 + $0x160] sm:$0xff]  ;;  %v88_v7 = vld [vmem:[%s2834_s1 + $0x170] sm:$0xff] }
  0x11   :  { %v1345_v6 = vpack.c.bf16 %v89_v62, %v85_v61  ;;  %v91_v8 = vld [vmem:[%s2834_s1 + $0x188] sm:$0xff]  ;;  %v93_v10 = vld [vmem:[%s2834_s1 + $0x198] sm:$0xff]  ;;  %v1315_v12 = vpack.c.bf16 %v86_v4, %v82_v2  ;;  %v1347_v13 = vpack.c.bf16 %v88_v7, %v84_v5  ;;  %v90_v15 = vld [vmem:[%s2834_s1 + $0x180] sm:$0xff] }
  0x12   :  { %1308 = vmatpush1.bf16.msra.mxu0 %v1307_v49  ;;  %v95_v9 = vld [vmem:[%s2834_s1 + $0x1a8] sm:$0xff]  ;;  %v97_v11 = vld [vmem:[%s2834_s1 + $0x1b8] sm:$0xff]  ;;  %v94_v16 = vld [vmem:[%s2834_s1 + $0x1a0] sm:$0xff] }
  0x13   :  { %1340 = vmatpush1.bf16.msra.mxu1 %v1339_v52  ;;  %1310 = vmatprep.subr.bf16.mxu0 %v1309_v53  ;;  %v1317_v14 = vpack.c.bf16 %v95_v9, %v91_v8  ;;  %v92_v17 = vld [vmem:[%s2834_s1 + $0x190] sm:$0xff]  ;;  %v1349_v18 = vpack.c.bf16 %v97_v11, %v93_v10  ;;  %v99_v20 = vld [vmem:[%s2834_s1 + $0x1c8] sm:$0xff]  ;;  %v101_v22 = vld [vmem:[%s2834_s1 + $0x1d8] sm:$0xff]  ;;  %v1319_v24 = vpack.c.bf16 %v94_v16, %v90_v15 }
  0x14   :  { %1342 = vmatprep.subr.bf16.mxu1 %v1341_v57  ;;  %v96_v19 = vld [vmem:[%s2834_s1 + $0x1b0] sm:$0xff]  ;;  %v103_v21 = vld [vmem:[%s2834_s1 + $0x1e8] sm:$0xff]  ;;  %v105_v23 = vld [vmem:[%s2834_s1 + $0x1f8] sm:$0xff] }
  0x15   :  { %v1351_v25 = vpack.c.bf16 %v96_v19, %v92_v17  ;;  %v1321_v26 = vpack.c.bf16 %v103_v21, %v99_v20  ;;  %v98_v27 = vld [vmem:[%s2834_s1 + $0x1c0] sm:$0xff]  ;;  %v1353_v29 = vpack.c.bf16 %v105_v23, %v101_v22  ;;  %v100_v30 = vld [vmem:[%s2834_s1 + $0x1d0] sm:$0xff]  ;;  %v515_v32 = vld [vmem:[%s2835_s3 + $0x8] sm:$0xff] }
  0x16   :  { %1312 = vmatpush1.bf16.msra.mxu0 %v1311_v63  ;;  %v102_v28 = vld [vmem:[%s2834_s1 + $0x1e0] sm:$0xff]  ;;  %v104_v31 = vld [vmem:[%s2834_s1 + $0x1f0] sm:$0xff]  ;;  %v517_v33 = vld [vmem:[%s2835_s3 + $0x18] sm:$0xff] }
  0x17   :  { %1344 = vmatpush1.bf16.msra.mxu1 %v1343_v0  ;;  %1314 = vmatprep.subr.bf16.mxu0 %v1313_v1  ;;  %v1323_v34 = vpack.c.bf16 %v102_v28, %v98_v27  ;;  %v1355_v35 = vpack.c.bf16 %v104_v31, %v100_v30  ;;  %v1357_v36 = vpack.c.bf16 %v517_v33, %v515_v32  ;;  %v514_v37 = vld [vmem:[%s2835_s3] sm:$0xff]  ;;  %v516_v38 = vld [vmem:[%s2835_s3 + $0x10] sm:$0xff]  ;;  %v519_v39 = vld [vmem:[%s2835_s3 + $0x28] sm:$0xff] }
  0x18   :  { %1346 = vmatprep.subr.bf16.mxu1 %v1345_v6  ;;  %v521_v40 = vld [vmem:[%s2835_s3 + $0x38] sm:$0xff]  ;;  %v26_v41 = vld [vmem:[%s2836_s0] sm:$0xff]  ;;  %v1359_v42 = vpack.c.bf16 %v516_v38, %v514_v37  ;;  %v520_v45 = vld [vmem:[%s2835_s3 + $0x30] sm:$0xff] }
  0x19   :  { %v1361_v43 = vpack.c.bf16 %v521_v40, %v519_v39  ;;  %v518_v44 = vld [vmem:[%s2835_s3 + $0x20] sm:$0xff]  ;;  %v523_v46 = vld [vmem:[%s2835_s3 + $0x48] sm:$0xff]  ;;  %v525_v47 = vld [vmem:[%s2835_s3 + $0x58] sm:$0xff] }
  0x1a   :  { %1316 = vmatpush1.bf16.msra.mxu0 %v1315_v12  ;;  %v27_v48 = vld [vmem:[%s2836_s0 + $0x8] sm:$0xff]  ;;  %v1363_v49 = vpack.c.bf16 %v520_v45, %v518_v44  ;;  %v1365_v50 = vpack.c.bf16 %v525_v47, %v523_v46  ;;  %v522_v51 = vld [vmem:[%s2835_s3 + $0x40] sm:$0xff]  ;;  %v524_v52 = vld [vmem:[%s2835_s3 + $0x50] sm:$0xff] }
  0x1b   :  { %1348 = vmatpush1.bf16.msra.mxu1 %v1347_v13  ;;  %1318 = vmatprep.subr.bf16.mxu0 %v1317_v14  ;;  %v579_v53 = vld [vmem:[%s2835_s3 + $0x208] sm:$0xff]  ;;  %v529_v55 = vld [vmem:[%s2835_s3 + $0x78] sm:$0xff]  ;;  %v28_v57 = vld [vmem:[%s2836_s0 + $0x10] sm:$0xff]  ;;  %v1367_v61 = vpack.c.bf16 %v524_v52, %v522_v51 }
  0x1c   :  { %1350 = vmatprep.subr.bf16.mxu1 %v1349_v18  ;;  %v527_v54 = vld [vmem:[%s2835_s3 + $0x68] sm:$0xff]  ;;  %v581_v56 = vld [vmem:[%s2835_s3 + $0x218] sm:$0xff]  ;;  %v578_v59 = vld [vmem:[%s2835_s3 + $0x200] sm:$0xff] }
  0x1d   :  { %v1909_v58 = vpack.c.bf16 %v581_v56, %v579_v53  ;;  %v580_v60 = vld [vmem:[%s2835_s3 + $0x210] sm:$0xff]  ;;  %v583_v63 = vld [vmem:[%s2835_s3 + $0x228] sm:$0xff]  ;;  %v585_v0 = vld [vmem:[%s2835_s3 + $0x238] sm:$0xff]  ;;  %v1369_v1 = vpack.c.bf16 %v529_v55, %v527_v54 }
  0x1e   :  { %1320 = vmatpush1.bf16.msra.mxu0 %v1319_v24  ;;  %v1918_v62 = vpack.c.bf16 %v580_v60, %v578_v59  ;;  %v526_v2 = vld [vmem:[%s2835_s3 + $0x60] sm:$0xff]  ;;  %v528_v4 = vld [vmem:[%s2835_s3 + $0x70] sm:$0xff]  ;;  %v1933_v5 = vpack.c.bf16 %v585_v0, %v583_v63  ;;  %v531_v7 = vld [vmem:[%s2835_s3 + $0x88] sm:$0xff] }
  0x1f   :  { %1352 = vmatpush1.bf16.msra.mxu1 %v1351_v25  ;;  %1322 = vmatprep.subr.bf16.mxu0 %v1321_v26  ;;  %v582_v6 = vld [vmem:[%s2835_s3 + $0x220] sm:$0xff]  ;;  %v533_v8 = vld [vmem:[%s2835_s3 + $0x98] sm:$0xff]  ;;  %v584_v9 = vld [vmem:[%s2835_s3 + $0x230] sm:$0xff]  ;;  %v1371_v14 = vpack.c.bf16 %v528_v4, %v526_v2 }
  0x20   :  { %1354 = vmatprep.subr.bf16.mxu1 %v1353_v29  ;;  %v29_v10 = vld [vmem:[%s2836_s0 + $0x18] sm:$0xff]  ;;  %v1952_v11 = vpack.c.bf16 %v584_v9, %v582_v6  ;;  %v587_v12 = vld [vmem:[%s2835_s3 + $0x248] sm:$0xff]  ;;  %v586_v15 = vld [vmem:[%s2835_s3 + $0x240] sm:$0xff]  ;;  %v1373_v17 = vpack.c.bf16 %v533_v8, %v531_v7 }
  0x21   :  { %v589_v13 = vld [vmem:[%s2835_s3 + $0x258] sm:$0xff]  ;;  %v588_v16 = vld [vmem:[%s2835_s3 + $0x250] sm:$0xff]  ;;  %v530_v18 = vld [vmem:[%s2835_s3 + $0x80] sm:$0xff] }
  0x22   :  { %1324 = vmatpush1.bf16.msra.mxu0 %v1323_v34  ;;  %v532_v19 = vld [vmem:[%s2835_s3 + $0x90] sm:$0xff]  ;;  %v535_v20 = vld [vmem:[%s2835_s3 + $0xa8] sm:$0xff]  ;;  %v1977_v21 = vpack.c.bf16 %v589_v13, %v587_v12  ;;  %v537_v22 = vld [vmem:[%s2835_s3 + $0xb8] sm:$0xff]  ;;  %v1983_v23 = vpack.c.bf16 %v588_v16, %v586_v15 }
  0x23   :  { %1356 = vmatpush1.bf16.msra.mxu1 %v1355_v35  ;;  %1358 = vmatprep.subr.bf16.mxu0 %v1357_v36  ;;  %v591_v24 = vld [vmem:[%s2835_s3 + $0x268] sm:$0xff]  ;;  %v593_v25 = vld [vmem:[%s2835_s3 + $0x278] sm:$0xff]  ;;  %v30_v26 = vld [vmem:[%s2836_s0 + $0x20] sm:$0xff]  ;;  %v1375_v29 = vpack.c.bf16 %v532_v19, %v530_v18  ;;  %v1377_v30 = vpack.c.bf16 %v537_v22, %v535_v20 }
  0x24   :  { %1517 = vmatprep.subr.bf16.mxu1 %v1909_v58  ;;  %v590_v27 = vld [vmem:[%s2835_s3 + $0x260] sm:$0xff]  ;;  %v592_v28 = vld [vmem:[%s2835_s3 + $0x270] sm:$0xff]  ;;  %v539_v33 = vld [vmem:[%s2835_s3 + $0xc8] sm:$0xff]  ;;  %v2012_v34 = vpack.c.bf16 %v593_v25, %v591_v24 }
  0x25   :  { %193 = vmatmul.mubr.f32.vlgmr.msra.gmra.mrb[0].mxu0 %v26_v41  ;;  %v534_v31 = vld [vmem:[%s2835_s3 + $0xa0] sm:$0xff]  ;;  %v536_v32 = vld [vmem:[%s2835_s3 + $0xb0] sm:$0xff]  ;;  %v541_v35 = vld [vmem:[%s2835_s3 + $0xd8] sm:$0xff]  ;;  %v2018_v36 = vpack.c.bf16 %v592_v28, %v590_v27 }
  0x26   :  { %354 = vmatmul.mubr.f32.vlgmr.msra.gmra.mrb[0].mxu1 %v26_v41  ;;  %198 = vmatprep.mubr.f32.mxu0 %v1614_v3  ;;  %v595_v37 = vld [vmem:[%s2835_s3 + $0x288] sm:$0xff]  ;;  %v597_v38 = vld [vmem:[%s2835_s3 + $0x298] sm:$0xff]  ;;  %v594_v40 = vld [vmem:[%s2835_s3 + $0x280] sm:$0xff] }
  0x27   :  { %359 = vmatprep.mubr.f32.mxu1 %v1614_v3  ;;  %1360 = vmatpush1.bf16.msra.mxu0 %v1359_v42  ;;  %v31_v39 = vld [vmem:[%s2836_s0 + $0x28] sm:$0xff]  ;;  %v596_v41 = vld [vmem:[%s2835_s3 + $0x290] sm:$0xff]  ;;  %v1379_v42 = vpack.c.bf16 %v536_v32, %v534_v31  ;;  %v538_v44 = vld [vmem:[%s2835_s3 + $0xc0] sm:$0xff]  ;;  %v2047_v47 = vpack.c.bf16 %v597_v38, %v595_v37 }
  0x28   :  { %1362 = vmatprep.subr.bf16.mxu0 %v1361_v43  ;;  %1533 = vmatpush1.bf16.msra.mxu1 %v1918_v62  ;;  %v1381_v43 = vpack.c.bf16 %v541_v35, %v539_v33  ;;  %v540_v45 = vld [vmem:[%s2835_s3 + $0xd0] sm:$0xff]  ;;  %v543_v46 = vld [vmem:[%s2835_s3 + $0xe8] sm:$0xff]  ;;  %v601_v51 = vld [vmem:[%s2835_s3 + $0x2b8] sm:$0xff] }
  0x29   :  { %199 = vmatmul.mubr.f32.gmra.mrb[2].mxu0 %v27_v48  ;;  %1518 = vmatprep.subr.bf16.mxu1 %v1933_v5  ;;  %v32_v52 = vld [vmem:[%s2836_s0 + $0x30] sm:$0xff]  ;;  %v598_v53 = vld [vmem:[%s2835_s3 + $0x2a0] sm:$0xff]  ;;  %v1383_v55 = vpack.c.bf16 %v540_v45, %v538_v44  ;;  %v549_v63 = vld [vmem:[%s2835_s3 + $0x118] sm:$0xff] }
  0x2a   :  { %360 = vmatmul.mubr.f32.gmra.mrb[2].mxu1 %v27_v48  ;;  %204 = vmatprep.mubr.f32.mxu0 %v1614_v3  ;;  %v545_v48 = vld [vmem:[%s2835_s3 + $0xf8] sm:$0xff]  ;;  %v600_v54 = vld [vmem:[%s2835_s3 + $0x2b0] sm:$0xff]  ;;  %v546_v6 = vld [vmem:[%s2835_s3 + $0x100] sm:$0xff] }
  0x2b   :  { %365 = vmatprep.mubr.f32.mxu1 %v1614_v3  ;;  %1364 = vmatpush1.bf16.msra.mxu0 %v1363_v49  ;;  %v2053_v49 = vpack.c.bf16 %v596_v41, %v594_v40  ;;  %v1385_v56 = vpack.c.bf16 %v545_v48, %v543_v46  ;;  %v544_v59 = vld [vmem:[%s2835_s3 + $0xf0] sm:$0xff]  ;;  %v2088_v0 = vpack.c.bf16 %v600_v54, %v598_v53  ;;  %v551_v8 = vld [vmem:[%s2835_s3 + $0x128] sm:$0xff]  ;;  %v553_v9 = vld [vmem:[%s2835_s3 + $0x138] sm:$0xff] }
  0x2c   :  { %1366 = vmatprep.subr.bf16.mxu0 %v1365_v50  ;;  %1534 = vmatpush1.bf16.msra.mxu1 %v1952_v11  ;;  %v599_v50 = vld [vmem:[%s2835_s3 + $0x2a8] sm:$0xff]  ;;  %v548_v7 = vld [vmem:[%s2835_s3 + $0x110] sm:$0xff]  ;;  %v1393_v13 = vpack.c.bf16 %v553_v9, %v551_v8  ;;  %v554_v22 = vld [vmem:[%s2835_s3 + $0x140] sm:$0xff] }
  0x2d   :  { %205 = vmatmul.mubr.f32.gmra.mrb[4].mxu0 %v28_v57  ;;  %1519 = vmatprep.subr.bf16.mxu1 %v1977_v21  ;;  %v2079_v60 = vpack.c.bf16 %v601_v51, %v599_v50  ;;  %v1391_v12 = vpack.c.bf16 %v548_v7, %v546_v6  ;;  %v552_v15 = vld [vmem:[%s2835_s3 + $0x130] sm:$0xff]  ;;  %v555_v16 = vld [vmem:[%s2835_s3 + $0x148] sm:$0xff]  ;;  %v565_v33 = vld [vmem:[%s2835_s3 + $0x198] sm:$0xff] }
  0x2e   :  { %366 = vmatmul.mubr.f32.gmra.mrb[4].mxu1 %v28_v57  ;;  %210 = vmatprep.mubr.f32.mxu0 %v1614_v3  ;;  %v542_v57 = vld [vmem:[%s2835_s3 + $0xe0] sm:$0xff]  ;;  %v35_v18 = vld [vmem:[%s2836_s0 + $0x48] sm:$0xff]  ;;  %v556_v24 = vld [vmem:[%s2835_s3 + $0x150] sm:$0xff] }
  0x2f   :  { %371 = vmatprep.mubr.f32.mxu1 %v1614_v3  ;;  %1368 = vmatpush1.bf16.msra.mxu0 %v1367_v61  ;;  %v547_v61 = vld [vmem:[%s2835_s3 + $0x108] sm:$0xff]  ;;  %v1387_v2 = vpack.c.bf16 %v544_v59, %v542_v57  ;;  %v36_v27 = vld [vmem:[%s2836_s0 + $0x50] sm:$0xff]  ;;  %v1399_v28 = vpack.c.bf16 %v556_v24, %v554_v22  ;;  %v37_v35 = vld [vmem:[%s2836_s0 + $0x58] sm:$0xff] }
  0x30   :  { %1370 = vmatprep.subr.bf16.mxu0 %v1369_v1  ;;  %1535 = vmatpush1.bf16.msra.mxu1 %v1983_v23  ;;  %v33_v1 = vld [vmem:[%s2836_s0 + $0x38] sm:$0xff]  ;;  %v1389_v4 = vpack.c.bf16 %v549_v63, %v547_v61  ;;  %v559_v25 = vld [vmem:[%s2835_s3 + $0x168] sm:$0xff]  ;;  %v560_v31 = vld [vmem:[%s2835_s3 + $0x170] sm:$0xff] }
  0x31   :  { %211 = vmatmul.mubr.f32.gmra.mrb[6].mxu0 %v29_v10  ;;  %1520 = vmatprep.subr.bf16.mxu1 %v2012_v34  ;;  %v563_v32 = vld [vmem:[%s2835_s3 + $0x188] sm:$0xff]  ;;  %v564_v40 = vld [vmem:[%s2835_s3 + $0x190] sm:$0xff]  ;;  %v566_v46 = vld [vmem:[%s2835_s3 + $0x1a0] sm:$0xff] }
  0x32   :  { %372 = vmatmul.mubr.f32.gmra.mrb[6].mxu1 %v29_v10  ;;  %216 = vmatprep.mubr.f32.mxu0 %v1614_v3  ;;  %v34_v10 = vld [vmem:[%s2836_s0 + $0x40] sm:$0xff]  ;;  %v1405_v38 = vpack.c.bf16 %v565_v33, %v563_v32  ;;  %v567_v41 = vld [vmem:[%s2835_s3 + $0x1a8] sm:$0xff]  ;;  %v568_v48 = vld [vmem:[%s2835_s3 + $0x1b0] sm:$0xff] }
  0x33   :  { %377 = vmatprep.mubr.f32.mxu1 %v1614_v3  ;;  %1372 = vmatpush1.bf16.msra.mxu0 %v1371_v14  ;;  %v550_v14 = vld [vmem:[%s2835_s3 + $0x120] sm:$0xff]  ;;  %v571_v50 = vld [vmem:[%s2835_s3 + $0x1c8] sm:$0xff]  ;;  %v573_v51 = vld [vmem:[%s2835_s3 + $0x1d8] sm:$0xff]  ;;  %v1411_v53 = vpack.c.bf16 %v568_v48, %v566_v46 }
  0x34   :  { %1374 = vmatprep.subr.bf16.mxu0 %v1373_v17  ;;  %1536 = vmatpush1.bf16.msra.mxu1 %v2018_v36  ;;  %v557_v17 = vld [vmem:[%s2835_s3 + $0x158] sm:$0xff]  ;;  %v1395_v19 = vpack.c.bf16 %v552_v15, %v550_v14  ;;  %v1413_v54 = vpack.c.bf16 %v573_v51, %v571_v50  ;;  %v40_v57 = vld [vmem:[%s2836_s0 + $0x70] sm:$0xff]  ;;  %v603_v63 = vld [vmem:[%s2835_s3 + $0x2c8] sm:$0xff] }
  0x35   :  { %217 = vmatmul.mubr.f32.gmra.mrb[8].mxu0 %v30_v26  ;;  %1521 = vmatprep.subr.bf16.mxu1 %v2047_v47  ;;  %v1397_v20 = vpack.c.bf16 %v557_v17, %v555_v16  ;;  %v41_v61 = vld [vmem:[%s2836_s0 + $0x78] sm:$0xff]  ;;  %v575_v6 = vld [vmem:[%s2835_s3 + $0x1e8] sm:$0xff]  ;;  %v606_v17 = vld [vmem:[%s2835_s3 + $0x2e0] sm:$0xff] }
  0x36   :  { %378 = vmatmul.mubr.f32.gmra.mrb[8].mxu1 %v30_v26  ;;  %222 = vmatprep.mubr.f32.mxu0 %v1614_v3  ;;  %v561_v26 = vld [vmem:[%s2835_s3 + $0x178] sm:$0xff]  ;;  %v607_v14 = vld [vmem:[%s2835_s3 + $0x2e8] sm:$0xff] }
  0x37   :  { %383 = vmatprep.mubr.f32.mxu1 %v1614_v3  ;;  %1376 = vmatpush1.bf16.msra.mxu0 %v1375_v29  ;;  %v1401_v29 = vpack.c.bf16 %v561_v26, %v559_v25  ;;  %v577_v7 = vld [vmem:[%s2835_s3 + $0x1f8] sm:$0xff]  ;;  %v610_v25 = vld [vmem:[%s2835_s3 + $0x300] sm:$0xff]  ;;  %v619_v33 = vld [vmem:[%s2835_s3 + $0x348] sm:$0xff] }
  0x38   :  { %1378 = vmatprep.subr.bf16.mxu0 %v1377_v30  ;;  %1537 = vmatpush1.bf16.msra.mxu1 %v2053_v49  ;;  %v558_v30 = vld [vmem:[%s2835_s3 + $0x160] sm:$0xff]  ;;  %v1417_v9 = vpack.c.bf16 %v577_v7, %v575_v6  ;;  %v609_v15 = vld [vmem:[%s2835_s3 + $0x2f8] sm:$0xff]  ;;  %v627_v48 = vld [vmem:[%s2835_s3 + $0x388] sm:$0xff] }
  0x39   :  { %223 = vmatmul.mubr.f32.gmra.mrb[10].mxu0 %v31_v39  ;;  %1522 = vmatprep.subr.bf16.mxu1 %v2079_v60  ;;  %v1403_v37 = vpack.c.bf16 %v560_v31, %v558_v30  ;;  %v2251_v16 = vpack.c.bf16 %v609_v15, %v607_v14  ;;  %v613_v22 = vld [vmem:[%s2835_s3 + $0x318] sm:$0xff]  ;;  %v614_v30 = vld [vmem:[%s2835_s3 + $0x320] sm:$0xff]  ;;  %v616_v31 = vld [vmem:[%s2835_s3 + $0x330] sm:$0xff] }
  0x3a   :  { %384 = vmatmul.mubr.f32.gmra.mrb[10].mxu1 %v31_v39  ;;  %228 = vmatprep.mubr.f32.mxu0 %v1614_v3  ;;  %v562_v39 = vld [vmem:[%s2835_s3 + $0x180] sm:$0xff]  ;;  %v2296_v32 = vpack.c.bf16 %v616_v31, %v614_v30  ;;  %v629_v50 = vld [vmem:[%s2835_s3 + $0x398] sm:$0xff]  ;;  %v636_v7 = vld [vmem:[%s2835_s3 + $0x3d0] sm:$0xff] }
  0x3b   :  { %389 = vmatprep.mubr.f32.mxu1 %v1614_v3  ;;  %1380 = vmatpush1.bf16.msra.mxu0 %v1379_v42  ;;  %v569_v42 = vld [vmem:[%s2835_s3 + $0x1b8] sm:$0xff]  ;;  %v1407_v44 = vpack.c.bf16 %v564_v40, %v562_v39  ;;  %v620_v39 = vld [vmem:[%s2835_s3 + $0x350] sm:$0xff]  ;;  %v2342_v51 = vpack.c.bf16 %v629_v50, %v627_v48  ;;  %v634_v6 = vld [vmem:[%s2835_s3 + $0x3c0] sm:$0xff] }
  0x3c   :  { %1382 = vmatprep.subr.bf16.mxu0 %v1381_v43  ;;  %1538 = vmatpush1.bf16.msra.mxu1 %v2088_v0  ;;  %v38_v43 = vld [vmem:[%s2836_s0 + $0x60] sm:$0xff]  ;;  %v1409_v45 = vpack.c.bf16 %v569_v42, %v567_v41  ;;  %v623_v41 = vld [vmem:[%s2835_s3 + $0x368] sm:$0xff]  ;;  %v625_v42 = vld [vmem:[%s2835_s3 + $0x378] sm:$0xff] }
  0x3d   :  { %229 = vmatmul.mubr.f32.gmra.mrb[12].mxu0 %v32_v52  ;;  %v638_v14 = vld [vmem:[%s2835_s3 + $0x3e0] sm:$0xff]  ;;  %v640_v15 = vld [vmem:[%s2835_s3 + $0x3f0] sm:$0xff] }
  0x3e   :  { %390 = vmatmul.mubr.f32.gmra.mrb[12].mxu1 %v32_v52  ;;  %234 = vmatprep.mubr.f32.mxu0 %v1614_v3  ;;  %v39_v52 = vld [vmem:[%s2836_s0 + $0x68] sm:$0xff] }
  0x3f   :  { %395 = vmatprep.mubr.f32.mxu1 %v1614_v3  ;;  %1384 = vmatpush1.bf16.msra.mxu0 %v1383_v55  ;;  %v570_v55 = vld [vmem:[%s2835_s3 + $0x1c0] sm:$0xff] }
  0x40   :  { %1386 = vmatprep.subr.bf16.mxu0 %v1385_v56  ;;  %v572_v56 = vld [vmem:[%s2835_s3 + $0x1d0] sm:$0xff] }
  0x41   :  { %235 = vmatmul.mubr.f32.gmra.mrb[14].mxu0 %v33_v1  ;;  %v1415_v59 = vpack.c.bf16 %v572_v56, %v570_v55  ;;  %v631_v55 = vld [vmem:[%s2835_s3 + $0x3a8] sm:$0xff]  ;;  %v633_v56 = vld [vmem:[%s2835_s3 + $0x3b8] sm:$0xff] }
  0x42   :  { %396 = vmatmul.mubr.f32.gmra.mrb[14].mxu1 %v33_v1  ;;  %240 = vmatprep.mubr.f32.mxu0 %v1614_v3  ;;  %v605_v1 = vld [vmem:[%s2835_s3 + $0x2d8] sm:$0xff] }
  0x43   :  { %401 = vmatprep.mubr.f32.mxu1 %v1614_v3  ;;  %1388 = vmatpush1.bf16.msra.mxu0 %v1387_v2  ;;  %v2221_v2 = vpack.c.bf16 %v605_v1, %v603_v63  ;;  %v635_v1 = vld [vmem:[%s2835_s3 + $0x3c8] sm:$0xff] }
  0x44   :  { %1390 = vmatprep.subr.bf16.mxu0 %v1389_v4  ;;  %v602_v4 = vld [vmem:[%s2835_s3 + $0x2c0] sm:$0xff] }
  0x45   :  { %241 = vmatmul.mubr.f32.gmra.mrb[16].mxu0 %v34_v10  ;;  %1523 = vmatprep.subr.bf16.mxu1 %v2221_v2 }
  0x46   :  { %402 = vmatmul.mubr.f32.gmra.mrb[16].mxu1 %v34_v10  ;;  %246 = vmatprep.mubr.f32.mxu0 %v1614_v3  ;;  %v574_v10 = vld [vmem:[%s2835_s3 + $0x1e0] sm:$0xff] }
  0x47   :  { %407 = vmatprep.mubr.f32.mxu1 %v1614_v3  ;;  %1392 = vmatpush1.bf16.msra.mxu0 %v1391_v12  ;;  %v576_v12 = vld [vmem:[%s2835_s3 + $0x1f0] sm:$0xff] }
  0x48   :  { %1394 = vmatprep.subr.bf16.mxu0 %v1393_v13  ;;  %v1419_v13 = vpack.c.bf16 %v576_v12, %v574_v10  ;;  %v639_v10 = vld [vmem:[%s2835_s3 + $0x3e8] sm:$0xff]  ;;  %v641_v12 = vld [vmem:[%s2835_s3 + $0x3f8] sm:$0xff] }
  0x49   :  { %247 = vmatmul.mubr.f32.gmra.mrb[18].mxu0 %v35_v18 }
  0x4a   :  { %408 = vmatmul.mubr.f32.gmra.mrb[18].mxu1 %v35_v18  ;;  %252 = vmatprep.mubr.f32.mxu0 %v1614_v3  ;;  %v608_v18 = vld [vmem:[%s2835_s3 + $0x2f0] sm:$0xff] }
  0x4b   :  { %413 = vmatprep.mubr.f32.mxu1 %v1614_v3  ;;  %1396 = vmatpush1.bf16.msra.mxu0 %v1395_v19  ;;  %v2259_v19 = vpack.c.bf16 %v608_v18, %v606_v17  ;;  %v2404_v17 = vpack.c.bf16 %v640_v15, %v638_v14  ;;  %v108_v18 = vlaneseq }
  0x4c   :  { %1398 = vmatprep.subr.bf16.mxu0 %v1397_v20  ;;  %v611_v20 = vld [vmem:[%s2835_s3 + $0x308] sm:$0xff] }
  0x4d   :  { %253 = vmatmul.mubr.f32.gmra.mrb[20].mxu0 %v36_v27  ;;  %v2270_v24 = vpack.c.bf16 %v613_v22, %v611_v20  ;;  %v2408_v20 = vshrl.u32 %v108_v18, 7 }
  0x4e   :  { %414 = vmatmul.mubr.f32.gmra.mrb[20].mxu1 %v36_v27  ;;  %258 = vmatprep.mubr.f32.mxu0 %v1614_v3  ;;  %v615_v27 = vld [vmem:[%s2835_s3 + $0x328] sm:$0xff] }
  0x4f   :  { %419 = vmatprep.mubr.f32.mxu1 %v1614_v3  ;;  %1400 = vmatpush1.bf16.msra.mxu0 %v1399_v28  ;;  %v617_v28 = vld [vmem:[%s2835_s3 + $0x338] sm:$0xff]  ;;  %v110_v22 = vsub.s32 0, %v2408_v20 }
  0x50   :  { %1402 = vmatprep.subr.bf16.mxu0 %v1401_v29  ;;  %v2288_v29 = vpack.c.bf16 %v617_v28, %v615_v27 }
  0x51   :  { %259 = vmatmul.mubr.f32.gmra.mrb[22].mxu0 %v37_v35 }
  0x52   :  { %420 = vmatmul.mubr.f32.gmra.mrb[22].mxu1 %v37_v35  ;;  %264 = vmatprep.mubr.f32.mxu0 %v1614_v3  ;;  %v621_v35 = vld [vmem:[%s2835_s3 + $0x358] sm:$0xff] }
  0x53   :  { %425 = vmatprep.mubr.f32.mxu1 %v1614_v3  ;;  %1404 = vmatpush1.bf16.msra.mxu0 %v1403_v37  ;;  %v2306_v37 = vpack.c.bf16 %v621_v35, %v619_v33 }
  0x54   :  { %1406 = vmatprep.subr.bf16.mxu0 %v1405_v38  ;;  %v618_v38 = vld [vmem:[%s2835_s3 + $0x340] sm:$0xff] }
  0x55   :  { %265 = vmatmul.mubr.f32.gmra.mrb[24].mxu0 %v38_v43  ;;  %v2314_v40 = vpack.c.bf16 %v620_v39, %v618_v38 }
  0x56   :  { %426 = vmatmul.mubr.f32.gmra.mrb[24].mxu1 %v38_v43  ;;  %270 = vmatprep.mubr.f32.mxu0 %v1614_v3  ;;  %v2324_v43 = vpack.c.bf16 %v625_v42, %v623_v41 }
  0x57   :  { %431 = vmatprep.mubr.f32.mxu1 %v1614_v3  ;;  %1408 = vmatpush1.bf16.msra.mxu0 %v1407_v44  ;;  %v622_v44 = vld [vmem:[%s2835_s3 + $0x360] sm:$0xff] }
  0x58   :  { %1410 = vmatprep.subr.bf16.mxu0 %v1409_v45  ;;  %v624_v45 = vld [vmem:[%s2835_s3 + $0x370] sm:$0xff] }
  0x59   :  { %271 = vmatmul.mubr.f32.gmra.mrb[26].mxu0 %v39_v52  ;;  %v2332_v46 = vpack.c.bf16 %v624_v45, %v622_v44 }
  0x5a   :  { %432 = vmatmul.mubr.f32.gmra.mrb[26].mxu1 %v39_v52  ;;  %276 = vmatprep.mubr.f32.mxu0 %v1614_v3  ;;  %v626_v52 = vld [vmem:[%s2835_s3 + $0x380] sm:$0xff] }
  0x5b   :  { %437 = vmatprep.mubr.f32.mxu1 %v1614_v3  ;;  %1412 = vmatpush1.bf16.msra.mxu0 %v1411_v53  ;;  %v628_v53 = vld [vmem:[%s2835_s3 + $0x390] sm:$0xff] }
  0x5c   :  { %1414 = vmatprep.subr.bf16.mxu0 %v1413_v54  ;;  %v2350_v54 = vpack.c.bf16 %v628_v53, %v626_v52 }
  0x5d   :  { %277 = vmatmul.mubr.f32.gmra.mrb[28].mxu0 %v40_v57 }
  0x5e   :  { %438 = vmatmul.mubr.f32.gmra.mrb[28].mxu1 %v40_v57  ;;  %282 = vmatprep.mubr.f32.mxu0 %v1614_v3  ;;  %v2360_v57 = vpack.c.bf16 %v633_v56, %v631_v55 }
  0x5f   :  { %443 = vmatprep.mubr.f32.mxu1 %v1614_v3  ;;  %1416 = vmatpush1.bf16.msra.mxu0 %v1415_v59  ;;  %v604_v3 = vld [vmem:[%s2835_s3 + $0x2d0] sm:$0xff]  ;;  %v630_v59 = vld [vmem:[%s2835_s3 + $0x3a0] sm:$0xff] }
  0x60   :  { %v2235_v8 = vpack.c.bf16 %v604_v3, %v602_v4  ;;  %1418 = vmatprep.subr.bf16.mxu0 %v1417_v9  ;;  %v637_v4 = vld [vmem:[%s2835_s3 + $0x3d8] sm:$0xff]  ;;  %v2386_v9 = vpack.c.bf16 %v636_v7, %v634_v6 }
  0x61   :  { %283 = vmatmul.mubr.f32.gmra.mrb[30].mxu0 %v41_v61  ;;  %v2378_v3 = vpack.c.bf16 %v637_v4, %v635_v1 }
  0x62   :  { %444 = vmatmul.mubr.f32.gmra.mrb[30].mxu1 %v41_v61  ;;  %v632_v61 = vld [vmem:[%s2835_s3 + $0x3b0] sm:$0xff] }
  0x63   :  { %1539 = vmatpush1.bf16.msra.mxu1 %v2235_v8  ;;  %1420 = vmatpush1.bf16.msra.mxu0 %v1419_v13  ;;  %v2368_v63 = vpack.c.bf16 %v632_v61, %v630_v59  ;;  %v2396_v13 = vpack.c.bf16 %v641_v12, %v639_v10 }
  0x64   :  { %1524 = vmatprep.subr.bf16.mxu1 %v2251_v16  ;;  %1422 = vmatprep.subr.bf16.mxu0 %v1909_v58  ;;  %v612_v58 = vld [vmem:[%s2835_s3 + $0x310] sm:$0xff] }
  0x65   :  { %v2278_v26 = vpack.c.bf16 %v612_v58, %v610_v25  ;;  %v2414_v25 = vld [vmem:[%s2837_s2] sm:$0xf]  ;;  %v114_v58 = vsub.s32 1, %v2408_v20 }
  0x66   :  { %v2420_v27 = vrot.slane %v2414_v25, %v110_v22 }
  0x67   :  { %1540 = vmatpush1.bf16.msra.mxu1 %v2259_v19  ;;  %v2425_v28 = vrot.slane %v2414_v25, %v114_v58 }
  0x68   :  { %1525 = vmatprep.subr.bf16.mxu1 %v2270_v24 }
  0x6b   :  { %1541 = vmatpush1.bf16.msra.mxu1 %v2278_v26 }
  0x6c   :  { %1526 = vmatprep.subr.bf16.mxu1 %v2288_v29 }
  0x6f   :  { %1542 = vmatpush1.bf16.msra.mxu1 %v2296_v32 }
  0x70   :  { %1527 = vmatprep.subr.bf16.mxu1 %v2306_v37 }
  0x73   :  { %1543 = vmatpush1.bf16.msra.mxu1 %v2314_v40 }
  0x74   :  { %1528 = vmatprep.subr.bf16.mxu1 %v2324_v43 }
  0x77   :  { %1544 = vmatpush1.bf16.msra.mxu1 %v2332_v46 }
  0x78   :  { %1529 = vmatprep.subr.bf16.mxu1 %v2342_v51 }
  0x7b   :  { %1545 = vmatpush1.bf16.msra.mxu1 %v2350_v54 }
  0x7c   :  { %1530 = vmatprep.subr.bf16.mxu1 %v2360_v57 }
  0x7f   :  { %1546 = vmatpush1.bf16.msra.mxu1 %v2368_v63 }
  0x80   :  { %1531 = vmatprep.subr.bf16.mxu1 %v2378_v3 }
  0x83   :  { %1547 = vmatpush1.bf16.msra.mxu1 %v2386_v9 }
  0x84   :  { %1532 = vmatprep.subr.bf16.mxu1 %v2396_v13 }
  0x87   :  { %1548 = vmatpush1.bf16.msra.mxu1 %v2404_v17 }
  0xf8   :  { %v194_v30 = vpop.f32.mrb[0].mxu0 }
  0xf9   :  { %v195_v31 = vadd.f32 %v194_v30, %v2420_v27  ;;  %v196_v33 = vpop.f32.mrb[1].mxu0  ;;  %v2428_v35 = vpop.f32.mrb[0].mxu1 }
  0xfa   :  { %v197_v38 = vadd.f32 %v196_v33, %v2425_v28  ;;  %v2431_v39 = vpop.f32.mrb[1].mxu1 }
  0xfb   :  { %v450_v44 = vmax.f32 %v195_v31, 0.0 }
  0xfc   :  { %v451_v41 = vmax.f32 %v197_v38, 0.0  ;;  %v200_v42 = vpop.f32.mrb[2].mxu0 }
  0xfd   :  { %v201_v45 = vadd.f32 %v200_v42, %v2420_v27  ;;  %v202_v48 = vpop.f32.mrb[3].mxu0  ;;  %v2434_v50 = vpop.f32.mrb[2].mxu1 }
  0xfe   :  { %v203_v52 = vadd.f32 %v202_v48, %v2425_v28  ;;  %718 = vmatprep.mubr.f32.mxu0 %v451_v41  ;;  %v2437_v53 = vpop.f32.mrb[3].mxu1 }
  0xff   :  { %719 = vmatmul.mubr.f32.vlgmr.msra.gmra.mrb[32].mxu0 %v450_v44  ;;  %v454_v59 = vmax.f32 %v201_v45, 0.0 }
 0x100   :  { %v455_v55 = vmax.f32 %v203_v52, 0.0  ;;  %1424 = vmatpush1.bf16.msra.mxu0 %v1918_v62  ;;  %v206_v56 = vpop.f32.mrb[4].mxu0 }
 0x101   :  { %v207_v61 = vadd.f32 %v206_v56, %v2420_v27  ;;  %v208_v1 = vpop.f32.mrb[5].mxu0  ;;  %1426 = vmatprep.subr.bf16.mxu0 %v1933_v5  ;;  %v2442_v4 = vpop.f32.mrb[4].mxu1 }
 0x102   :  { %v209_v6 = vadd.f32 %v208_v1, %v2425_v28  ;;  %724 = vmatprep.mubr.f32.mxu0 %v455_v55  ;;  %v2445_v7 = vpop.f32.mrb[5].mxu1 }
 0x103   :  { %725 = vmatmul.mubr.f32.gmra.mrb[34].mxu0 %v454_v59  ;;  %v458_v62 = vmax.f32 %v207_v61, 0.0 }
 0x104   :  { %v459_v10 = vmax.f32 %v209_v6, 0.0  ;;  %1428 = vmatpush1.bf16.msra.mxu0 %v1952_v11  ;;  %v212_v12 = vpop.f32.mrb[6].mxu0 }
 0x105   :  { %v213_v14 = vadd.f32 %v212_v12, %v2420_v27  ;;  %v214_v15 = vpop.f32.mrb[7].mxu0  ;;  %1430 = vmatprep.subr.bf16.mxu0 %v1977_v21  ;;  %v2450_v18 = vpop.f32.mrb[6].mxu1 }
 0x106   :  { %v215_v5 = vadd.f32 %v214_v15, %v2425_v28  ;;  %730 = vmatprep.mubr.f32.mxu0 %v459_v10  ;;  %v2453_v30 = vpop.f32.mrb[7].mxu1  ;;  %v122_v15 = vsub.s32 3, %v2408_v20 }
 0x107   :  { %731 = vmatmul.mubr.f32.gmra.mrb[36].mxu0 %v458_v62  ;;  %v462_v11 = vmax.f32 %v213_v14, 0.0 }
 0x108   :  { %v463_v31 = vmax.f32 %v215_v5, 0.0  ;;  %1432 = vmatpush1.bf16.msra.mxu0 %v1983_v23  ;;  %v218_v33 = vpop.f32.mrb[8].mxu0 }
 0x109   :  { %v219_v38 = vadd.f32 %v218_v33, %v2420_v27  ;;  %v220_v41 = vpop.f32.mrb[9].mxu0  ;;  %1434 = vmatprep.subr.bf16.mxu0 %v2012_v34  ;;  %v2458_v42 = vpop.f32.mrb[8].mxu1 }
 0x10a   :  { %v221_v21 = vadd.f32 %v220_v41, %v2425_v28  ;;  %736 = vmatprep.mubr.f32.mxu0 %v463_v31  ;;  %v2461_v44 = vpop.f32.mrb[9].mxu1 }
 0x10b   :  { %737 = vmatmul.mubr.f32.gmra.mrb[38].mxu0 %v462_v11  ;;  %v466_v23 = vmax.f32 %v219_v38, 0.0 }
 0x10c   :  { %v467_v45 = vmax.f32 %v221_v21, 0.0  ;;  %1436 = vmatpush1.bf16.msra.mxu0 %v2018_v36  ;;  %v224_v48 = vpop.f32.mrb[10].mxu0 }
 0x10d   :  { %v225_v52 = vadd.f32 %v224_v48, %v2420_v27  ;;  %v226_v55 = vpop.f32.mrb[11].mxu0  ;;  %1438 = vmatprep.subr.bf16.mxu0 %v2047_v47  ;;  %v2466_v56 = vpop.f32.mrb[10].mxu1  ;;  %v118_v47 = vsub.s32 2, %v2408_v20 }
 0x10e   :  { %v227_v34 = vadd.f32 %v226_v55, %v2425_v28  ;;  %742 = vmatprep.mubr.f32.mxu0 %v467_v45  ;;  %v2469_v59 = vpop.f32.mrb[11].mxu1  ;;  %v2493_v45 = vrot.slane %v2414_v25, %v122_v15 }
 0x10f   :  { %743 = vmatmul.mubr.f32.gmra.mrb[40].mxu0 %v466_v23  ;;  %v470_v36 = vmax.f32 %v225_v52, 0.0  ;;  %v2487_v38 = vrot.slane %v2414_v25, %v118_v47 }
 0x110   :  { %v471_v61 = vmax.f32 %v227_v34, 0.0  ;;  %1440 = vmatpush1.bf16.msra.mxu0 %v2053_v49  ;;  %v230_v1 = vpop.f32.mrb[12].mxu0 }
 0x111   :  { %v231_v6 = vadd.f32 %v230_v1, %v2420_v27  ;;  %v232_v10 = vpop.f32.mrb[13].mxu0  ;;  %1442 = vmatprep.subr.bf16.mxu0 %v2079_v60  ;;  %v2474_v12 = vpop.f32.mrb[12].mxu1 }
 0x112   :  { %v233_v62 = vadd.f32 %v232_v10, %v2425_v28  ;;  %748 = vmatprep.mubr.f32.mxu0 %v471_v61  ;;  %v2478_v14 = vpop.f32.mrb[13].mxu1 }
 0x113   :  { %749 = vmatmul.mubr.f32.gmra.mrb[42].mxu0 %v470_v36  ;;  %v474_v31 = vmax.f32 %v231_v6, 0.0 }
 0x114   :  { %v475_v49 = vmax.f32 %v233_v62, 0.0  ;;  %1444 = vmatpush1.bf16.msra.mxu0 %v2088_v0  ;;  %v236_v5 = vpop.f32.mrb[14].mxu0 }
 0x115   :  { %v237_v33 = vadd.f32 %v236_v5, %v2420_v27  ;;  %v238_v60 = vpop.f32.mrb[15].mxu0  ;;  %1446 = vmatprep.subr.bf16.mxu0 %v2221_v2  ;;  %v2484_v11 = vpop.f32.mrb[14].mxu1 }
 0x116   :  { %v239_v41 = vadd.f32 %v238_v60, %v2425_v28  ;;  %754 = vmatprep.mubr.f32.mxu0 %v475_v49  ;;  %v2490_v21 = vpop.f32.mrb[15].mxu1 }
 0x117   :  { %755 = vmatmul.mubr.f32.gmra.mrb[44].mxu0 %v474_v31  ;;  %v478_v23 = vmax.f32 %v237_v33, 0.0 }
 0x118   :  { %v479_v0 = vmax.f32 %v239_v41, 0.0  ;;  %1448 = vmatpush1.bf16.msra.mxu0 %v2235_v8  ;;  %v242_v48 = vpop.f32.mrb[16].mxu0 }
 0x119   :  { %v243_v2 = vadd.f32 %v242_v48, %v2420_v27  ;;  %v244_v52 = vpop.f32.mrb[17].mxu0  ;;  %v403_v55 = vpop.f32.mrb[16].mxu1  ;;  %1450 = vmatprep.subr.bf16.mxu0 %v2251_v16 }
 0x11a   :  { %v245_v34 = vadd.f32 %v244_v52, %v2425_v28  ;;  %v404_v61 = vadd.f32 %v403_v55, %v2487_v38  ;;  %760 = vmatprep.mubr.f32.mxu0 %v479_v0  ;;  %v405_v1 = vpop.f32.mrb[17].mxu1 }
 0x11b   :  { %v406_v25 = vadd.f32 %v405_v1, %v2493_v45  ;;  %761 = vmatmul.mubr.f32.gmra.mrb[46].mxu0 %v478_v23  ;;  %v482_v10 = vmax.f32 %v243_v2, 0.0 }
 0x11c   :  { %v483_v36 = vmax.f32 %v245_v34, 0.0  ;;  %v484_v6 = vmax.f32 %v404_v61, 0.0  ;;  %1452 = vmatpush1.bf16.msra.mxu0 %v2259_v19  ;;  %v248_v8 = vpop.f32.mrb[18].mxu0 }
 0x11d   :  { %v485_v47 = vmax.f32 %v406_v25, 0.0  ;;  %v249_v62 = vadd.f32 %v248_v8, %v2420_v27  ;;  %v250_v15 = vpop.f32.mrb[19].mxu0  ;;  %v409_v16 = vpop.f32.mrb[18].mxu1  ;;  %1454 = vmatprep.subr.bf16.mxu0 %v2270_v24 }
 0x11e   :  { %v251_v49 = vadd.f32 %v250_v15, %v2425_v28  ;;  %v410_v5 = vadd.f32 %v409_v16, %v2487_v38  ;;  %766 = vmatprep.mubr.f32.mxu0 %v483_v36  ;;  %v411_v31 = vpop.f32.mrb[19].mxu1 }
 0x11f   :  { %v412_v33 = vadd.f32 %v411_v31, %v2493_v45  ;;  %767 = vmatmul.mubr.f32.gmra.mrb[48].mxu0 %v482_v10  ;;  %927 = vmatprep.mubr.f32.mxu1 %v485_v47  ;;  %v486_v0 = vmax.f32 %v249_v62, 0.0 }
 0x120   :  { %v487_v19 = vmax.f32 %v251_v49, 0.0  ;;  %v488_v60 = vmax.f32 %v410_v5, 0.0  ;;  %1456 = vmatpush1.bf16.msra.mxu0 %v2278_v26  ;;  %v254_v41 = vpop.f32.mrb[20].mxu0  ;;  %928 = vmatmul.mubr.f32.vlgmr.msra.gmra.mrb[32].mxu1 %v484_v6 }
 0x121   :  { %v489_v48 = vmax.f32 %v412_v33, 0.0  ;;  %v255_v24 = vadd.f32 %v254_v41, %v2420_v27  ;;  %v256_v23 = vpop.f32.mrb[21].mxu0  ;;  %v415_v2 = vpop.f32.mrb[20].mxu1  ;;  %1458 = vmatprep.subr.bf16.mxu0 %v2288_v29 }
 0x122   :  { %v257_v52 = vadd.f32 %v256_v23, %v2425_v28  ;;  %v416_v55 = vadd.f32 %v415_v2, %v2487_v38  ;;  %772 = vmatprep.mubr.f32.mxu0 %v487_v19  ;;  %v417_v34 = vpop.f32.mrb[21].mxu1 }
 0x123   :  { %v418_v61 = vadd.f32 %v417_v34, %v2493_v45  ;;  %773 = vmatmul.mubr.f32.gmra.mrb[50].mxu0 %v486_v0  ;;  %933 = vmatprep.mubr.f32.mxu1 %v489_v48  ;;  %v490_v36 = vmax.f32 %v255_v24, 0.0 }
 0x124   :  { %v491_v26 = vmax.f32 %v257_v52, 0.0  ;;  %v492_v1 = vmax.f32 %v416_v55, 0.0  ;;  %1460 = vmatpush1.bf16.msra.mxu0 %v2296_v32  ;;  %v260_v25 = vpop.f32.mrb[22].mxu0  ;;  %934 = vmatmul.mubr.f32.gmra.mrb[34].mxu1 %v488_v60 }
 0x125   :  { %v493_v6 = vmax.f32 %v418_v61, 0.0  ;;  %v261_v29 = vadd.f32 %v260_v25, %v2420_v27  ;;  %v262_v8 = vpop.f32.mrb[23].mxu0  ;;  %v421_v10 = vpop.f32.mrb[22].mxu1  ;;  %1462 = vmatprep.subr.bf16.mxu0 %v2306_v37 }
 0x126   :  { %v263_v47 = vadd.f32 %v262_v8, %v2425_v28  ;;  %v422_v62 = vadd.f32 %v421_v10, %v2487_v38  ;;  %778 = vmatprep.mubr.f32.mxu0 %v491_v26  ;;  %v423_v15 = vpop.f32.mrb[23].mxu1 }
 0x127   :  { %v424_v16 = vadd.f32 %v423_v15, %v2493_v45  ;;  %779 = vmatmul.mubr.f32.gmra.mrb[52].mxu0 %v490_v36  ;;  %939 = vmatprep.mubr.f32.mxu1 %v493_v6  ;;  %v494_v31 = vmax.f32 %v261_v29, 0.0 }
 0x128   :  { %v495_v32 = vmax.f32 %v263_v47, 0.0  ;;  %v496_v49 = vmax.f32 %v422_v62, 0.0  ;;  %1464 = vmatpush1.bf16.msra.mxu0 %v2314_v40  ;;  %v266_v5 = vpop.f32.mrb[24].mxu0  ;;  %940 = vmatmul.mubr.f32.gmra.mrb[36].mxu1 %v492_v1 }
 0x129   :  { %v497_v33 = vmax.f32 %v424_v16, 0.0  ;;  %v267_v37 = vadd.f32 %v266_v5, %v2420_v27  ;;  %v268_v19 = vpop.f32.mrb[25].mxu0  ;;  %v427_v60 = vpop.f32.mrb[24].mxu1  ;;  %1466 = vmatprep.subr.bf16.mxu0 %v2324_v43 }
 0x12a   :  { %v269_v41 = vadd.f32 %v268_v19, %v2425_v28  ;;  %v428_v0 = vadd.f32 %v427_v60, %v2487_v38  ;;  %784 = vmatprep.mubr.f32.mxu0 %v495_v32  ;;  %v429_v48 = vpop.f32.mrb[25].mxu1 }
 0x12b   :  { %v430_v24 = vadd.f32 %v429_v48, %v2493_v45  ;;  %785 = vmatmul.mubr.f32.gmra.mrb[54].mxu0 %v494_v31  ;;  %945 = vmatprep.mubr.f32.mxu1 %v497_v33  ;;  %v498_v52 = vmax.f32 %v267_v37, 0.0 }
 0x12c   :  { %v499_v40 = vmax.f32 %v269_v41, 0.0  ;;  %v500_v23 = vmax.f32 %v428_v0, 0.0  ;;  %1468 = vmatpush1.bf16.msra.mxu0 %v2332_v46  ;;  %v272_v2 = vpop.f32.mrb[26].mxu0  ;;  %946 = vmatmul.mubr.f32.gmra.mrb[38].mxu1 %v496_v49 }
 0x12d   :  { %v501_v55 = vmax.f32 %v430_v24, 0.0  ;;  %v273_v43 = vadd.f32 %v272_v2, %v2420_v27  ;;  %v274_v34 = vpop.f32.mrb[27].mxu0  ;;  %v433_v61 = vpop.f32.mrb[26].mxu1  ;;  %1470 = vmatprep.subr.bf16.mxu0 %v2342_v51 }
 0x12e   :  { %v275_v26 = vadd.f32 %v274_v34, %v2425_v28  ;;  %v434_v1 = vadd.f32 %v433_v61, %v2487_v38  ;;  %790 = vmatprep.mubr.f32.mxu0 %v499_v40  ;;  %v435_v25 = vpop.f32.mrb[27].mxu1  ;;  %v364_v40 = vadd.f32 %v2437_v53, %v2493_v45  ;;  %v362_v53 = vadd.f32 %v2434_v50, %v2487_v38 }
 0x12f   :  { %v436_v36 = vadd.f32 %v435_v25, %v2493_v45  ;;  %791 = vmatmul.mubr.f32.gmra.mrb[56].mxu0 %v498_v52  ;;  %951 = vmatprep.mubr.f32.mxu1 %v501_v55  ;;  %v502_v8 = vmax.f32 %v273_v43, 0.0  ;;  %v370_v55 = vadd.f32 %v2445_v7, %v2493_v45  ;;  %v368_v34 = vadd.f32 %v2442_v4, %v2487_v38 }
 0x130   :  { %v503_v46 = vmax.f32 %v275_v26, 0.0  ;;  %v504_v6 = vmax.f32 %v434_v1, 0.0  ;;  %1472 = vmatpush1.bf16.msra.mxu0 %v2350_v54  ;;  %v278_v29 = vpop.f32.mrb[28].mxu0  ;;  %952 = vmatmul.mubr.f32.gmra.mrb[40].mxu1 %v500_v23  ;;  %v358_v54 = vadd.f32 %v2431_v39, %v2493_v45  ;;  %v457_v52 = vmax.f32 %v364_v40, 0.0  ;;  %v1016_v40 = vld [vmem:[%s2838_s5 + $0x40] sm:$0xff] }
 0x131   :  { %v505_v10 = vmax.f32 %v436_v36, 0.0  ;;  %v279_v51 = vadd.f32 %v278_v29, %v2420_v27  ;;  %v280_v47 = vpop.f32.mrb[29].mxu0  ;;  %v439_v62 = vpop.f32.mrb[28].mxu1  ;;  %1474 = vmatprep.subr.bf16.mxu0 %v2360_v57  ;;  %v456_v43 = vmax.f32 %v362_v53, 0.0  ;;  %v460_v61 = vmax.f32 %v368_v34, 0.0  ;;  %v1036_v53 = vld [vmem:[%s2838_s5 + $0xe0] sm:$0xff] }
 0x132   :  { %v281_v15 = vadd.f32 %v280_v47, %v2425_v28  ;;  %v440_v16 = vadd.f32 %v439_v62, %v2487_v38  ;;  %796 = vmatprep.mubr.f32.mxu0 %v503_v46  ;;  %v441_v32 = vpop.f32.mrb[29].mxu1  ;;  %v374_v50 = vadd.f32 %v2450_v18, %v2487_v38  ;;  %v380_v4 = vadd.f32 %v2458_v42, %v2487_v38  ;;  %v1027_v47 = vld [vmem:[%s2838_s5 + $0x98] sm:$0xff]  ;;  %v1021_v34 = vld [vmem:[%s2838_s5 + $0x68] sm:$0xff] }
 0x133   :  { %v442_v49 = vadd.f32 %v441_v32, %v2493_v45  ;;  %797 = vmatmul.mubr.f32.gmra.mrb[58].mxu0 %v502_v8  ;;  %957 = vmatprep.mubr.f32.mxu1 %v505_v10  ;;  %v506_v57 = vmax.f32 %v279_v51, 0.0  ;;  %v386_v18 = vadd.f32 %v2466_v56, %v2487_v38  ;;  %v392_v42 = vadd.f32 %v2474_v12, %v2487_v38  ;;  %v1008_v10 = vld [vmem:[%s2838_s5] sm:$0xff]  ;;  %v1026_v51 = vld [vmem:[%s2838_s5 + $0x90] sm:$0xff] }
 0x134   :  { %v507_v5 = vmax.f32 %v281_v15, 0.0  ;;  %v508_v31 = vmax.f32 %v440_v16, 0.0  ;;  %1476 = vmatpush1.bf16.msra.mxu0 %v2368_v63  ;;  %v284_v33 = vpop.f32.mrb[30].mxu0  ;;  %958 = vmatmul.mubr.f32.gmra.mrb[42].mxu1 %v504_v6  ;;  %v453_v63 = vmax.f32 %v358_v54, 0.0  ;;  %v464_v1 = vmax.f32 %v374_v50, 0.0  ;;  %v1010_v15 = vld [vmem:[%s2838_s5 + $0x10] sm:$0xff] }
 0x135   :  { %v509_v37 = vmax.f32 %v442_v49, 0.0  ;;  %v285_v19 = vadd.f32 %v284_v33, %v2420_v27  ;;  %v286_v60 = vpop.f32.mrb[31].mxu0  ;;  %v445_v41 = vpop.f32.mrb[30].mxu1  ;;  %1478 = vmatprep.subr.bf16.mxu0 %v2378_v3  ;;  %v356_v3 = vadd.f32 %v2428_v35, %v2487_v38  ;;  %v461_v35 = vmax.f32 %v370_v55, 0.0  ;;  %v1011_v16 = vld [vmem:[%s2838_s5 + $0x18] sm:$0xff]  ;;  %v1028_v49 = vld [vmem:[%s2838_s5 + $0xa0] sm:$0xff] }
 0x136   :  { %v287_v0 = vadd.f32 %v286_v60, %v2425_v28  ;;  %v446_v48 = vadd.f32 %v445_v41, %v2487_v38  ;;  %802 = vmatprep.mubr.f32.mxu0 %v507_v5  ;;  %v447_v39 = vpop.f32.mrb[31].mxu1  ;;  %v468_v36 = vmax.f32 %v380_v4, 0.0  ;;  %v472_v6 = vmax.f32 %v386_v18, 0.0  ;;  %v1029_v54 = vld [vmem:[%s2838_s5 + $0xa8] sm:$0xff]  ;;  %v1014_v41 = vld [vmem:[%s2838_s5 + $0x30] sm:$0xff]  ;;  %v1019_v55 = vld [vmem:[%s2838_s5 + $0x58] sm:$0xff] }
 0x137   :  { %v448_v24 = vadd.f32 %v447_v39, %v2493_v45  ;;  %803 = vmatmul.mubr.f32.gmra.mrb[60].mxu0 %v506_v57  ;;  %963 = vmatprep.mubr.f32.mxu1 %v509_v37  ;;  %v510_v27 = vmax.f32 %v285_v19, 0.0  ;;  %v476_v8 = vmax.f32 %v392_v42, 0.0  ;;  %v1489_v62 = vpack.c.bf16 %v1027_v47, %v1026_v51  ;;  %v1013_v33 = vld [vmem:[%s2838_s5 + $0x28] sm:$0xff]  ;;  %v1030_v37 = vld [vmem:[%s2838_s5 + $0xb0] sm:$0xff]  ;;  %v1031_v19 = vld [vmem:[%s2838_s5 + $0xb8] sm:$0xff] }
 0x138   :  { %v511_v23 = vmax.f32 %v287_v0, 0.0  ;;  %1480 = vmatpush1.bf16.msra.mxu0 %v2386_v9  ;;  %964 = vmatmul.mubr.f32.gmra.mrb[44].mxu1 %v508_v31  ;;  %v512_v28 = vmax.f32 %v446_v48, 0.0  ;;  %v452_v9 = vmax.f32 %v356_v3, 0.0  ;;  %v1491_v32 = vpack.c.bf16 %v1011_v16, %v1010_v15  ;;  %v1012_v31 = vld [vmem:[%s2838_s5 + $0x20] sm:$0xff]  ;;  %v1015_v0 = vld [vmem:[%s2838_s5 + $0x38] sm:$0xff] }
 0x139   :  { %v513_v2 = vmax.f32 %v448_v24, 0.0  ;;  %1482 = vmatprep.subr.bf16.mxu0 %v2396_v13  ;;  %v376_v13 = vadd.f32 %v2453_v30, %v2493_v45  ;;  %v388_v30 = vadd.f32 %v2469_v59, %v2493_v45  ;;  %v400_v59 = vadd.f32 %v2490_v21, %v2493_v45  ;;  %v1024_v21 = vld [vmem:[%s2838_s5 + $0x80] sm:$0xff]  ;;  %v1033_v24 = vld [vmem:[%s2838_s5 + $0xc8] sm:$0xff] }
 0x13a   :  { %808 = vmatprep.mubr.f32.mxu0 %v511_v23  ;;  %v1493_v5 = vpack.c.bf16 %v1029_v54, %v1028_v49  ;;  %v1495_v57 = vpack.c.bf16 %v1013_v33, %v1012_v31  ;;  %v1497_v60 = vpack.c.bf16 %v1031_v19, %v1030_v37  ;;  %v1499_v48 = vpack.c.bf16 %v1015_v0, %v1014_v41  ;;  %v1032_v39 = vld [vmem:[%s2838_s5 + $0xc0] sm:$0xff]  ;;  %v1017_v23 = vld [vmem:[%s2838_s5 + $0x48] sm:$0xff] }
 0x13b   :  { %809 = vmatmul.mubr.f32.gmra.mrb[62].mxu0 %v510_v27  ;;  %969 = vmatprep.mubr.f32.mxu1 %v513_v2  ;;  %v465_v7 = vmax.f32 %v376_v13, 0.0  ;;  %v473_v25 = vmax.f32 %v388_v30, 0.0  ;;  %v481_v29 = vmax.f32 %v400_v59, 0.0  ;;  %v1503_v3 = vpack.c.bf16 %v1017_v23, %v1016_v40  ;;  %v1034_v27 = vld [vmem:[%s2838_s5 + $0xd0] sm:$0xff]  ;;  %v1023_v30 = vld [vmem:[%s2838_s5 + $0x78] sm:$0xff] }
 0x13c   :  { %1484 = vmatpush1.bf16.msra.mxu0 %v2404_v17  ;;  %879 = vmatprep.mubr.f32.mxu0 %v453_v63  ;;  %v382_v17 = vadd.f32 %v2461_v44, %v2493_v45  ;;  %v394_v44 = vadd.f32 %v2478_v14, %v2493_v45  ;;  %v398_v14 = vadd.f32 %v2484_v11, %v2487_v38  ;;  %v1025_v45 = vld [vmem:[%s2838_s5 + $0x88] sm:$0xff]  ;;  %v642_v4 = vld [vmem:[%s2839_s4] sm:$0x3] }
 0x13d   :  { %970 = vmatmul.mubr.f32.gmra.mrb[46].mxu1 %v512_v28  ;;  %v1485_v12 = vpack.c.bf16 %v1025_v45, %v1024_v21  ;;  %v1009_v11 = vld [vmem:[%s2838_s5 + $0x8] sm:$0xff]  ;;  %v1501_v63 = vpack.c.bf16 %v1033_v24, %v1032_v39  ;;  %v1035_v28 = vld [vmem:[%s2838_s5 + $0xd8] sm:$0xff] }
 0x13e   :  { %v469_v26 = vmax.f32 %v382_v17, 0.0  ;;  %v477_v46 = vmax.f32 %v394_v44, 0.0  ;;  %v480_v56 = vmax.f32 %v398_v14, 0.0  ;;  %v1487_v38 = vpack.c.bf16 %v1009_v11, %v1008_v10  ;;  %v1038_v17 = vld [vmem:[%s2838_s5 + $0xf0] sm:$0xff] }
 0x13f   :  { %880 = vmatmul.mubr.f32.vlgmr.msra.gmra.mrb[32].mxu0 %v452_v9  ;;  %1486 = vmatprep.subr.bf16.mxu1 %v1485_v12  ;;  %v1505_v2 = vpack.c.bf16 %v1035_v28, %v1034_v27  ;;  %v2683_v44 = vrot.slane %v642_v4, %v114_v58 }
 0x140   :  { %885 = vmatprep.mubr.f32.mxu0 %v457_v52  ;;  %1488 = vmatpush3.bf16.msra.mxu1 %v1487_v38  ;;  %v1018_v52 = vld [vmem:[%s2838_s5 + $0x50] sm:$0xff] }
 0x141   :  { %1490 = vmatprep.subr.bf16.mxu1 %v1489_v62  ;;  %v1507_v9 = vpack.c.bf16 %v1019_v55, %v1018_v52 }
 0x143   :  { %886 = vmatmul.mubr.f32.gmra.mrb[34].mxu0 %v456_v43  ;;  %v1020_v43 = vld [vmem:[%s2838_s5 + $0x60] sm:$0xff] }
 0x144   :  { %891 = vmatprep.mubr.f32.mxu0 %v461_v35  ;;  %1492 = vmatpush3.bf16.msra.mxu1 %v1491_v32  ;;  %v1037_v35 = vld [vmem:[%s2838_s5 + $0xe8] sm:$0xff] }
 0x145   :  { %1494 = vmatprep.subr.bf16.mxu1 %v1493_v5  ;;  %v1509_v13 = vpack.c.bf16 %v1037_v35, %v1036_v53 }
 0x147   :  { %892 = vmatmul.mubr.f32.gmra.mrb[36].mxu0 %v460_v61  ;;  %v1039_v61 = vld [vmem:[%s2838_s5 + $0xf8] sm:$0xff] }
 0x148   :  { %897 = vmatprep.mubr.f32.mxu0 %v465_v7  ;;  %1496 = vmatpush3.bf16.msra.mxu1 %v1495_v57  ;;  %v1511_v7 = vpack.c.bf16 %v1021_v34, %v1020_v43  ;;  %v1513_v50 = vpack.c.bf16 %v1039_v61, %v1038_v17 }
 0x149   :  { %1498 = vmatprep.subr.bf16.mxu1 %v1497_v60 }
 0x14b   :  { %898 = vmatmul.mubr.f32.gmra.mrb[38].mxu0 %v464_v1 }
 0x14c   :  { %903 = vmatprep.mubr.f32.mxu0 %v469_v26  ;;  %1500 = vmatpush3.bf16.msra.mxu1 %v1499_v48  ;;  %v1022_v26 = vld [vmem:[%s2838_s5 + $0x70] sm:$0xff] }
 0x14d   :  { %1502 = vmatprep.subr.bf16.mxu1 %v1501_v63  ;;  %v1515_v1 = vpack.c.bf16 %v1023_v30, %v1022_v26 }
 0x14f   :  { %904 = vmatmul.mubr.f32.gmra.mrb[40].mxu0 %v468_v36 }
 0x150   :  { %909 = vmatprep.mubr.f32.mxu0 %v473_v25  ;;  %1504 = vmatpush3.bf16.msra.mxu1 %v1503_v3  ;;  %v2679_v25 = vrot.slane %v642_v4, %v110_v22 }
 0x151   :  { %1506 = vmatprep.subr.bf16.mxu1 %v1505_v2 }
 0x153   :  { %910 = vmatmul.mubr.f32.gmra.mrb[42].mxu0 %v472_v6 }
 0x154   :  { %915 = vmatprep.mubr.f32.mxu0 %v477_v46  ;;  %1508 = vmatpush3.bf16.msra.mxu1 %v1507_v9 }
 0x155   :  { %1510 = vmatprep.subr.bf16.mxu1 %v1509_v13 }
 0x157   :  { %916 = vmatmul.mubr.f32.gmra.mrb[44].mxu0 %v476_v8 }
 0x158   :  { %921 = vmatprep.mubr.f32.mxu0 %v481_v29  ;;  %1512 = vmatpush3.bf16.msra.mxu1 %v1511_v7 }
 0x159   :  { %1514 = vmatprep.subr.bf16.mxu1 %v1513_v50 }
 0x15b   :  { %922 = vmatmul.mubr.f32.gmra.mrb[46].mxu0 %v480_v56 }
 0x15c   :  { %1516 = vmatpush3.bf16.msra.mxu1 %v1515_v1 }
 0x1f2   :  { %v768_v36 = vpop.f32.mrb[48].mxu0 }
 0x1f3   :  { %v769_v18 = vadd.f32 %v768_v36, %v2679_v25  ;;  %v770_v46 = vpop.f32.mrb[49].mxu0  ;;  %v929_v59 = vpop.f32.mrb[32].mxu1 }
 0x1f4   :  { %v771_v6 = vadd.f32 %v770_v46, %v2683_v44  ;;  %v931_v42 = vpop.f32.mrb[33].mxu1 }
 0x1f5   :  { %v2687_v29 = vadd.f32 %v929_v59, %v769_v18 }
 0x1f6   :  { %v2689_v8 = vadd.f32 %v931_v42, %v771_v6  ;;  %v774_v14 = vpop.f32.mrb[50].mxu0 }
 0x1f7   :  { %v775_v22 = vadd.f32 %v774_v14, %v2679_v25  ;;  %v776_v56 = vpop.f32.mrb[51].mxu0  ;;  %v935_v21 = vpop.f32.mrb[34].mxu1 }
 0x1f8   :  { %v777_v20 = vadd.f32 %v776_v56, %v2683_v44  ;;  %v937_v58 = vpop.f32.mrb[35].mxu1 }
 0x1f9   :  { %v2693_v45 = vadd.f32 %v935_v21, %v775_v22 }
 0x1fa   :  { %v2695_v12 = vadd.f32 %v937_v58, %v777_v20  ;;  %v780_v10 = vpop.f32.mrb[52].mxu0 }
 0x1fb   :  { %v781_v11 = vadd.f32 %v780_v10, %v2679_v25  ;;  %v782_v38 = vpop.f32.mrb[53].mxu0  ;;  %v941_v51 = vpop.f32.mrb[36].mxu1 }
 0x1fc   :  { %v783_v47 = vadd.f32 %v782_v38, %v2683_v44  ;;  %v943_v62 = vpop.f32.mrb[37].mxu1 }
 0x1fd   :  { %v2699_v15 = vadd.f32 %v941_v51, %v781_v11 }
 0x1fe   :  { %v2701_v16 = vadd.f32 %v943_v62, %v783_v47  ;;  %v786_v32 = vpop.f32.mrb[54].mxu0 }
 0x1ff   :  { %v787_v49 = vadd.f32 %v786_v32, %v2679_v25  ;;  %v788_v54 = vpop.f32.mrb[55].mxu0  ;;  %v947_v5 = vpop.f32.mrb[38].mxu1 }
 0x200   :  { %v789_v31 = vadd.f32 %v788_v54, %v2683_v44  ;;  %v949_v33 = vpop.f32.mrb[39].mxu1 }
 0x201   :  { %v2705_v57 = vadd.f32 %v947_v5, %v787_v49 }
 0x202   :  { %v2707_v37 = vadd.f32 %v949_v33, %v789_v31  ;;  %v792_v19 = vpop.f32.mrb[56].mxu0 }
 0x203   :  { %v793_v60 = vadd.f32 %v792_v19, %v2679_v25  ;;  %v794_v41 = vpop.f32.mrb[57].mxu0  ;;  %v953_v0 = vpop.f32.mrb[40].mxu1 }
 0x204   :  { %v795_v48 = vadd.f32 %v794_v41, %v2683_v44  ;;  %v955_v39 = vpop.f32.mrb[41].mxu1 }
 0x205   :  { %v2711_v24 = vadd.f32 %v953_v0, %v793_v60 }
 0x206   :  { %v2713_v63 = vadd.f32 %v955_v39, %v795_v48  ;;  %v798_v40 = vpop.f32.mrb[58].mxu0 }
 0x207   :  { %v799_v23 = vadd.f32 %v798_v40, %v2679_v25  ;;  %v800_v3 = vpop.f32.mrb[59].mxu0  ;;  %v959_v27 = vpop.f32.mrb[42].mxu1 }
 0x208   :  { %v801_v28 = vadd.f32 %v800_v3, %v2683_v44  ;;  %v961_v2 = vpop.f32.mrb[43].mxu1 }
 0x209   :  { %v2717_v52 = vadd.f32 %v959_v27, %v799_v23 }
 0x20a   :  { %v2719_v55 = vadd.f32 %v961_v2, %v801_v28  ;;  %v804_v9 = vpop.f32.mrb[60].mxu0 }
 0x20b   :  { %v805_v53 = vadd.f32 %v804_v9, %v2679_v25  ;;  %v806_v35 = vpop.f32.mrb[61].mxu0  ;;  %v965_v13 = vpop.f32.mrb[44].mxu1 }
 0x20c   :  { %v807_v43 = vadd.f32 %v806_v35, %v2683_v44  ;;  %v967_v34 = vpop.f32.mrb[45].mxu1 }
 0x20d   :  { %v2723_v7 = vadd.f32 %v965_v13, %v805_v53 }
 0x20e   :  { %v2725_v17 = vadd.f32 %v967_v34, %v807_v43  ;;  %v810_v61 = vpop.f32.mrb[62].mxu0 }
 0x20f   :  { %v811_v50 = vadd.f32 %v810_v61, %v2679_v25  ;;  %v812_v26 = vpop.f32.mrb[63].mxu0 }
 0x210   :  { %v813_v30 = vadd.f32 %v812_v26, %v2683_v44  ;;  %v971_v1 = vpop.f32.mrb[46].mxu1 }
 0x211   :  { %v2729_v4 = vadd.f32 %v971_v1, %v811_v50  ;;  %v973_v36 = vpop.f32.mrb[47].mxu1 }
 0x212   :  { %v2731_v18 = vadd.f32 %v973_v36, %v813_v30  ;;  %v881_v46 = vpop.f32.mrb[32].mxu0 }
 0x213   :  { %v1549_v59 = vadd.f32 %v881_v46, %v2679_v25  ;;  %v883_v6 = vpop.f32.mrb[33].mxu0 }
 0x214   :  { %v1550_v42 = vadd.f32 %v883_v6, %v2683_v44  ;;  %v993_v6 = vmax.f32 %v2689_v8, 0.0  ;;  %v998_v8 = vmax.f32 %v2705_v57, 0.0  ;;  %v1007_v57 = vmax.f32 %v2731_v18, 0.0 }
 0x215   :  { %v976_v56 = vmax.f32 %v1549_v59, 0.0 }
 0x216   :  { %v977_v14 = vmax.f32 %v1550_v42, 0.0  ;;  %v887_v22 = vpop.f32.mrb[34].mxu0  ;;  %v992_v42 = vmax.f32 %v2687_v29, 0.0  ;;  %v1001_v29 = vmax.f32 %v2713_v63, 0.0  ;;  %v1006_v63 = vmax.f32 %v2729_v4, 0.0 }
 0x217   :  { %v1551_v21 = vadd.f32 %v887_v22, %v2679_v25  ;;  %v889_v20 = vpop.f32.mrb[35].mxu0  ;;  %v997_v22 = vmax.f32 %v2701_v16, 0.0  ;;  %v1002_v16 = vmax.f32 %v2717_v52, 0.0 }
 0x218   :  { %v1552_v58 = vadd.f32 %v889_v20, %v2683_v44  ;;  %1111 = vmatprep.mubr.f32.mxu1 %v977_v14  ;;  %v995_v14 = vmax.f32 %v2695_v12, 0.0  ;;  %v1000_v12 = vmax.f32 %v2711_v24, 0.0 }
 0x219   :  { %1112 = vmatmul.mubr.f32.vlgmr.msra.gmra.mrb[48].mxu1 %v976_v56  ;;  %v978_v38 = vmax.f32 %v1551_v21, 0.0  ;;  %v999_v56 = vmax.f32 %v2707_v37, 0.0  ;;  %v1004_v37 = vmax.f32 %v2723_v7, 0.0 }
 0x21a   :  { %v979_v10 = vmax.f32 %v1552_v58, 0.0  ;;  %v893_v11 = vpop.f32.mrb[36].mxu0 }
 0x21b   :  { %v1553_v51 = vadd.f32 %v893_v11, %v2679_v25  ;;  %v895_v47 = vpop.f32.mrb[37].mxu0 }
 0x21c   :  { %v1554_v62 = vadd.f32 %v895_v47, %v2683_v44  ;;  %1116 = vmatprep.mubr.f32.mxu1 %v979_v10 }
 0x21d   :  { %1117 = vmatmul.mubr.f32.gmra.mrb[50].mxu1 %v978_v38  ;;  %v980_v54 = vmax.f32 %v1553_v51, 0.0 }
 0x21e   :  { %v981_v32 = vmax.f32 %v1554_v62, 0.0  ;;  %v899_v49 = vpop.f32.mrb[38].mxu0 }
 0x21f   :  { %v1555_v5 = vadd.f32 %v899_v49, %v2679_v25  ;;  %v901_v31 = vpop.f32.mrb[39].mxu0 }
 0x220   :  { %v1556_v33 = vadd.f32 %v901_v31, %v2683_v44  ;;  %1121 = vmatprep.mubr.f32.mxu1 %v981_v32 }
 0x221   :  { %1122 = vmatmul.mubr.f32.gmra.mrb[52].mxu1 %v980_v54  ;;  %v982_v41 = vmax.f32 %v1555_v5, 0.0 }
 0x222   :  { %v983_v19 = vmax.f32 %v1556_v33, 0.0  ;;  %v905_v60 = vpop.f32.mrb[40].mxu0 }
 0x223   :  { %v1557_v0 = vadd.f32 %v905_v60, %v2679_v25  ;;  %v907_v48 = vpop.f32.mrb[41].mxu0 }
 0x224   :  { %v1558_v39 = vadd.f32 %v907_v48, %v2683_v44  ;;  %1126 = vmatprep.mubr.f32.mxu1 %v983_v19 }
 0x225   :  { %1127 = vmatmul.mubr.f32.gmra.mrb[54].mxu1 %v982_v41  ;;  %v984_v3 = vmax.f32 %v1557_v0, 0.0 }
 0x226   :  { %v985_v40 = vmax.f32 %v1558_v39, 0.0  ;;  %v911_v23 = vpop.f32.mrb[42].mxu0 }
 0x227   :  { %v1559_v27 = vadd.f32 %v911_v23, %v2679_v25  ;;  %v913_v28 = vpop.f32.mrb[43].mxu0 }
 0x228   :  { %v1560_v2 = vadd.f32 %v913_v28, %v2683_v44  ;;  %1131 = vmatprep.mubr.f32.mxu1 %v985_v40 }
 0x229   :  { %1132 = vmatmul.mubr.f32.gmra.mrb[56].mxu1 %v984_v3  ;;  %v986_v35 = vmax.f32 %v1559_v27, 0.0 }
 0x22a   :  { %v987_v9 = vmax.f32 %v1560_v2, 0.0  ;;  %v917_v53 = vpop.f32.mrb[44].mxu0 }
 0x22b   :  { %v1561_v13 = vadd.f32 %v917_v53, %v2679_v25  ;;  %v919_v43 = vpop.f32.mrb[45].mxu0 }
 0x22c   :  { %v1562_v34 = vadd.f32 %v919_v43, %v2683_v44  ;;  %1136 = vmatprep.mubr.f32.mxu1 %v987_v9 }
 0x22d   :  { %1137 = vmatmul.mubr.f32.gmra.mrb[58].mxu1 %v986_v35  ;;  %v988_v26 = vmax.f32 %v1561_v13, 0.0 }
 0x22e   :  { %v989_v61 = vmax.f32 %v1562_v34, 0.0  ;;  %v923_v50 = vpop.f32.mrb[46].mxu0 }
 0x22f   :  { %v1563_v30 = vadd.f32 %v923_v50, %v2679_v25  ;;  %v925_v1 = vpop.f32.mrb[47].mxu0  ;;  %v994_v25 = vmax.f32 %v2693_v45, 0.0  ;;  %v1003_v45 = vmax.f32 %v2719_v55, 0.0  ;;  %v2768_v55 = vld [vmem:[%s2840_s6] ss:$0 sm:$0xff] }
 0x230   :  { %v1564_v36 = vadd.f32 %v925_v1, %v2683_v44  ;;  %1141 = vmatprep.mubr.f32.mxu1 %v989_v61  ;;  %v996_v44 = vmax.f32 %v2699_v15, 0.0  ;;  %v1005_v15 = vmax.f32 %v2725_v17, 0.0 }
 0x231   :  { %1142 = vmatmul.mubr.f32.gmra.mrb[60].mxu1 %v988_v26  ;;  %v990_v59 = vmax.f32 %v1563_v30, 0.0 }
 0x232   :  { %v991_v46 = vmax.f32 %v1564_v36, 0.0 }
 0x234   :  { %1146 = vmatprep.mubr.f32.mxu1 %v991_v46 }
 0x235   :  { %1147 = vmatmul.mubr.f32.gmra.mrb[62].mxu1 %v990_v59 }
 0x236   :  { %1151 = vmatprep.mubr.f32.mxu1 %v993_v6 }
 0x239   :  { %1152 = vmatmul.mubr.f32.gmra.mrb[64].mxu1 %v992_v42 }
 0x23a   :  { %1156 = vmatprep.mubr.f32.mxu1 %v995_v14 }
 0x23d   :  { %1157 = vmatmul.mubr.f32.gmra.mrb[66].mxu1 %v994_v25 }
 0x23e   :  { %1161 = vmatprep.mubr.f32.mxu1 %v997_v22 }
 0x241   :  { %1162 = vmatmul.mubr.f32.gmra.mrb[68].mxu1 %v996_v44 }
 0x242   :  { %1166 = vmatprep.mubr.f32.mxu1 %v999_v56 }
 0x245   :  { %1167 = vmatmul.mubr.f32.gmra.mrb[70].mxu1 %v998_v8 }
 0x246   :  { %1171 = vmatprep.mubr.f32.mxu1 %v1001_v29 }
 0x249   :  { %1172 = vmatmul.mubr.f32.gmra.mrb[72].mxu1 %v1000_v12 }
 0x24a   :  { %1176 = vmatprep.mubr.f32.mxu1 %v1003_v45 }
 0x24d   :  { %1177 = vmatmul.mubr.f32.gmra.mrb[74].mxu1 %v1002_v16 }
 0x24e   :  { %1181 = vmatprep.mubr.f32.mxu1 %v1005_v15 }
 0x251   :  { %1182 = vmatmul.mubr.f32.gmra.mrb[76].mxu1 %v1004_v37 }
 0x252   :  { %1186 = vmatprep.mubr.f32.mxu1 %v1007_v57 }
 0x255   :  { %1187 = vmatmul.mubr.f32.gmra.mrb[78].mxu1 %v1006_v63 }
 0x2ec   :  { %v1245_v24 = vpop.f32.mrb[48].mxu1 }
 0x2ed   :  { %v1246_v52 = vpop.f32.mrb[49].mxu1 }
 0x2ee   :  { %v1247_v21 = vadd.f32 %v1246_v52, %v1245_v24 }
 0x2f0   :  { %v1114_v17 = vadd.f32 %v1247_v21, %v2768_v55  ;;  %v1248_v20 = vpop.f32.mrb[50].mxu1 }
 0x2f1   :  { %v1249_v58 = vpop.f32.mrb[51].mxu1 }
 0x2f2   :  { %1192 = vst [vmem:[%s2841_s7] sm:$0xff] %v1114_v17  ;;  %v1250_v7 = vadd.f32 %v1249_v58, %v1248_v20 }
 0x2f4   :  { %v1119_v4 = vadd.f32 %v1250_v7, %v2768_v55  ;;  %v1251_v18 = vpop.f32.mrb[52].mxu1 }
 0x2f5   :  { %v1252_v10 = vpop.f32.mrb[53].mxu1 }
 0x2f6   :  { %1193 = vst [vmem:[%s2841_s7 + $0x8] sm:$0xff] %v1119_v4  ;;  %v1253_v11 = vadd.f32 %v1252_v10, %v1251_v18 }
 0x2f8   :  { %v1124_v38 = vadd.f32 %v1253_v11, %v2768_v55  ;;  %v1254_v51 = vpop.f32.mrb[54].mxu1 }
 0x2f9   :  { %v1255_v47 = vpop.f32.mrb[55].mxu1 }
 0x2fa   :  { %1194 = vst [vmem:[%s2841_s7 + $0x10] sm:$0xff] %v1124_v38  ;;  %v1256_v62 = vadd.f32 %v1255_v47, %v1254_v51 }
 0x2fc   :  { %v1129_v32 = vadd.f32 %v1256_v62, %v2768_v55  ;;  %v1257_v49 = vpop.f32.mrb[56].mxu1 }
 0x2fd   :  { %v1258_v54 = vpop.f32.mrb[57].mxu1 }
 0x2fe   :  { %1195 = vst [vmem:[%s2841_s7 + $0x18] sm:$0xff] %v1129_v32  ;;  %v1259_v5 = vadd.f32 %v1258_v54, %v1257_v49 }
 0x300   :  { %v1134_v31 = vadd.f32 %v1259_v5, %v2768_v55  ;;  %v1260_v33 = vpop.f32.mrb[58].mxu1 }
 0x301   :  { %v1261_v19 = vpop.f32.mrb[59].mxu1 }
 0x302   :  { %1196 = vst [vmem:[%s2841_s7 + $0x20] sm:$0xff] %v1134_v31  ;;  %v1262_v60 = vadd.f32 %v1261_v19, %v1260_v33 }
 0x304   :  { %v1139_v41 = vadd.f32 %v1262_v60, %v2768_v55  ;;  %v1263_v0 = vpop.f32.mrb[60].mxu1 }
 0x305   :  { %v1264_v48 = vpop.f32.mrb[61].mxu1 }
 0x306   :  { %1197 = vst [vmem:[%s2841_s7 + $0x28] sm:$0xff] %v1139_v41  ;;  %v1265_v39 = vadd.f32 %v1264_v48, %v1263_v0 }
 0x308   :  { %v1144_v40 = vadd.f32 %v1265_v39, %v2768_v55  ;;  %v1266_v23 = vpop.f32.mrb[62].mxu1 }
 0x309   :  { %v1267_v3 = vpop.f32.mrb[63].mxu1 }
 0x30a   :  { %1198 = vst [vmem:[%s2841_s7 + $0x30] sm:$0xff] %v1144_v40  ;;  %v1268_v27 = vadd.f32 %v1267_v3, %v1266_v23 }
 0x30c   :  { %v1149_v28 = vadd.f32 %v1268_v27, %v2768_v55  ;;  %v1269_v2 = vpop.f32.mrb[64].mxu1 }
 0x30d   :  { %v1270_v9 = vpop.f32.mrb[65].mxu1 }
 0x30e   :  { %1199 = vst [vmem:[%s2841_s7 + $0x38] sm:$0xff] %v1149_v28  ;;  %v1271_v53 = vadd.f32 %v1270_v9, %v1269_v2 }
 0x310   :  { %v1154_v35 = vadd.f32 %v1271_v53, %v2768_v55  ;;  %v1272_v13 = vpop.f32.mrb[66].mxu1 }
 0x311   :  { %v1273_v43 = vpop.f32.mrb[67].mxu1 }
 0x312   :  { %1200 = vst [vmem:[%s2841_s7 + $0x40] sm:$0xff] %v1154_v35  ;;  %v1274_v34 = vadd.f32 %v1273_v43, %v1272_v13 }
 0x314   :  { %v1159_v61 = vadd.f32 %v1274_v34, %v2768_v55  ;;  %v1275_v50 = vpop.f32.mrb[68].mxu1 }
 0x315   :  { %v1276_v26 = vpop.f32.mrb[69].mxu1 }
 0x316   :  { %1201 = vst [vmem:[%s2841_s7 + $0x48] sm:$0xff] %v1159_v61  ;;  %v1277_v30 = vadd.f32 %v1276_v26, %v1275_v50 }
 0x318   :  { %v1164_v1 = vadd.f32 %v1277_v30, %v2768_v55  ;;  %v1278_v36 = vpop.f32.mrb[70].mxu1 }
 0x319   :  { %v1279_v46 = vpop.f32.mrb[71].mxu1 }
 0x31a   :  { %1202 = vst [vmem:[%s2841_s7 + $0x50] sm:$0xff] %v1164_v1  ;;  %v1280_v59 = vadd.f32 %v1279_v46, %v1278_v36 }
 0x31c   :  { %v1169_v6 = vadd.f32 %v1280_v59, %v2768_v55  ;;  %v1281_v42 = vpop.f32.mrb[72].mxu1 }
 0x31d   :  { %v1282_v14 = vpop.f32.mrb[73].mxu1 }
 0x31e   :  { %1203 = vst [vmem:[%s2841_s7 + $0x58] sm:$0xff] %v1169_v6  ;;  %v1283_v25 = vadd.f32 %v1282_v14, %v1281_v42 }
 0x320   :  { %v1174_v22 = vadd.f32 %v1283_v25, %v2768_v55  ;;  %v1284_v44 = vpop.f32.mrb[74].mxu1 }
 0x321   :  { %v1285_v56 = vpop.f32.mrb[75].mxu1 }
 0x322   :  { %1204 = vst [vmem:[%s2841_s7 + $0x60] sm:$0xff] %v1174_v22  ;;  %v1286_v8 = vadd.f32 %v1285_v56, %v1284_v44 }
 0x324   :  { %v1179_v29 = vadd.f32 %v1286_v8, %v2768_v55  ;;  %v1287_v12 = vpop.f32.mrb[76].mxu1 }
 0x325   :  { %v1288_v45 = vpop.f32.mrb[77].mxu1 }
 0x326   :  { %1205 = vst [vmem:[%s2841_s7 + $0x68] sm:$0xff] %v1179_v29  ;;  %v1289_v16 = vadd.f32 %v1288_v45, %v1287_v12 }
 0x328   :  { %v1184_v15 = vadd.f32 %v1289_v16, %v2768_v55  ;;  %v1290_v37 = vpop.f32.mrb[78].mxu1 }
 0x329   :  { %v1291_v57 = vpop.f32.mrb[79].mxu1 }
 0x32a   :  { %1206 = vst [vmem:[%s2841_s7 + $0x70] sm:$0xff] %v1184_v15  ;;  %v1292_v63 = vadd.f32 %v1291_v57, %v1290_v37 }
 0x32c   :  { %v1189_v24 = vadd.f32 %v1292_v63, %v2768_v55 }
 0x32e   :  { %1207 = vst [vmem:[%s2841_s7 + $0x78] sm:$0xff] %v1189_v24 }

</bundles_post_ra>
